<compile_context>
chip_gen: v6e
topology: v6e:2x2x1
jax: 0.10.0
libtpu: 0.0.40
codegen_flags: <defaults>
</compile_context>

<pallas_src>
import math
import functools
import numpy as np

import jax
import jax.numpy as jnp
from jax.experimental import pallas as pl
from jax.experimental.pallas import tpu as pltpu


NEG_INF = -1e30          # key-padding bias: exp underflows to exactly 0 in f32
OUT_LANE_PAD = 128       # final projection padded from 2 -> 128 output lanes


# ----------------------------------------------------------------------------- helpers
def full_spec(shape):
    """BlockSpec passing the whole (small) array; constant block index => DMA'd once."""
    idx = (0,) * len(shape)
    return pl.BlockSpec(shape, lambda b, d, _idx=idx: _idx)


def _gelu_tanh(x):
    # tanh-approximate GELU; tanh lowers to the EUP slot (otherwise idle),
    # relieving VALU pressure vs. an erf polynomial on the (L, 4D) tensor.
    c = math.sqrt(2.0 / math.pi)
    return 0.5 * x * (1.0 + jnp.tanh(c * (x + 0.044715 * x * x * x)))


def sinusoidal_pos_emb(positions, dim, M=10000):
    # positions: (1, L) int -> (1, L, dim) float32, same math as SinusoidalPosEmb.
    half = dim // 2
    freqs = jnp.exp(jnp.arange(half, dtype=jnp.float32) * -(math.log(M) / half))
    ang = positions[..., None].astype(jnp.float32) * freqs[None, ...]
    return jnp.concatenate([jnp.sin(ang), jnp.cos(ang)], axis=-1)


def _fit_len(a, L, fill):
    cur = a.shape[1]
    if cur >= L:
        return a[:, :L]
    return jnp.pad(a, ((0, 0), (0, L - cur)), constant_values=fill)


# ----------------------------------------------------------------------------- kernel
def fused_encoder_kernel(
    x_ref, bias_ref,
    ln1g_ref, ln1b_ref, wqkv_ref, bqkv_ref, wo_ref, bo_ref,
    ln2g_ref, ln2b_ref, w1_ref, b1_ref, w2_ref, b2_ref,
    wout_ref, bout_ref,
    y_ref,
    x_scr,
    *, num_heads, head_dim, eps=1e-5,
):
    d = pl.program_id(1)
    depth = pl.num_programs(1)

    # Load the embedded input once per batch element; x stays resident in VMEM
    # scratch across the depth ("arbitrary") grid axis.
    @pl.when(d == 0)
    def _():
        x_scr[...] = x_ref[0]

    x = x_scr[...]                         # (L, D) f32
    bias = bias_ref[0]                     # (1, L) additive key-padding bias
    L, D = x.shape

    def layer_norm(v, g, b):
        mu = jnp.mean(v, axis=-1, keepdims=True)
        var = jnp.mean((v - mu) ** 2, axis=-1, keepdims=True)
        return (v - mu) * jax.lax.rsqrt(var + eps) * g + b

    # -------- self-attention block (pre-norm); 1/sqrt(head_dim) is baked into
    # the Q rows of W_qkv / b_qkv host-side, so no score scaling here.
    h = layer_norm(x, ln1g_ref[...], ln1b_ref[...]).astype(jnp.bfloat16)
    qkv = jnp.dot(h, wqkv_ref[...], preferred_element_type=jnp.float32) + bqkv_ref[...]
    q, k, v = qkv[:, :D], qkv[:, D:2 * D], qkv[:, 2 * D:]
    wo = wo_ref[...]                       # (D, D) bf16, loaded once

    attn = jnp.zeros((L, D), jnp.float32)
    for h_idx in range(num_heads):
        lo = h_idx * head_dim
        hi = lo + head_dim
        qh = q[:, lo:hi].astype(jnp.bfloat16)
        kh = k[:, lo:hi].astype(jnp.bfloat16)
        vh = v[:, lo:hi].astype(jnp.bfloat16)
        # scores = qh @ kh.T (contract feature axis, no explicit transpose)
        s = jax.lax.dot_general(qh, kh, (((1,), (1,)), ((), ())),
                                preferred_element_type=jnp.float32) + bias
        s = s - jnp.max(s, axis=-1, keepdims=True)
        p = jnp.exp(s)
        p = p * pl.reciprocal(jnp.sum(p, axis=-1, keepdims=True), approx=True)
        oh = jnp.dot(p.astype(jnp.bfloat16), vh, preferred_element_type=jnp.float32)
        # Fold the output projection per head -> no lane-axis concat.
        attn = attn + jnp.dot(oh.astype(jnp.bfloat16), wo[lo:hi, :],
                              preferred_element_type=jnp.float32)
    x = x + attn + bo_ref[...]             # dropout1: identity (eval)

    # -------- feed-forward block (pre-norm) --------
    h2 = layer_norm(x, ln2g_ref[...], ln2b_ref[...]).astype(jnp.bfloat16)
    f = jnp.dot(h2, w1_ref[...], preferred_element_type=jnp.float32) + b1_ref[...]
    f = _gelu_tanh(f)
    f = jnp.dot(f.astype(jnp.bfloat16), w2_ref[...],
                preferred_element_type=jnp.float32) + b2_ref[...]
    x = x + f                              # dropout2: identity (eval)
    x_scr[...] = x

    # -------- fused final projection on the last layer --------
    @pl.when(d == depth - 1)
    def _():
        y = jnp.dot(x.astype(jnp.bfloat16), wout_ref[...],
                    preferred_element_type=jnp.float32) + bout_ref[...]
        y_ref[0] = y


# ----------------------------------------------------------------------------- wrapper
def fused_encoder(x, key_bias, layer_params, out_params, depth, num_heads, head_dim):
    B, L, D = x.shape
    kernel = functools.partial(fused_encoder_kernel,
                               num_heads=num_heads, head_dim=head_dim)
    in_specs = (
        [pl.BlockSpec((1, L, D), lambda b, d: (b, 0, 0)),     # embedded input
         pl.BlockSpec((1, 1, L), lambda b, d: (b, 0, 0))]     # key-padding bias
        + [full_spec(p.shape) for p in layer_params]
        + [full_spec(p.shape) for p in out_params]
    )
    return pl.pallas_call(
        kernel,
        out_shape=jax.ShapeDtypeStruct((B, L, OUT_LANE_PAD), jnp.float32),
        grid=(B, depth),
        in_specs=in_specs,
        out_specs=pl.BlockSpec((1, L, OUT_LANE_PAD), lambda b, d: (b, 0, 0)),
        scratch_shapes=[pltpu.VMEM((L, D), jnp.float32)],     # resident activation
        compiler_params=pltpu.CompilerParams(
            dimension_semantics=("parallel", "arbitrary"),
            vmem_limit_bytes=32 * 1024 * 1024,
        ),
    )(x, key_bias, *layer_params, *out_params)


class RNAModelPallas:
    def __init__(self, dim=192, depth=12, head_size=32, pad_len_multiple=32,
                 key=jax.random.PRNGKey(0)):
        assert dim % head_size == 0 and dim % 2 == 0
        self.dim = dim
        self.depth = depth
        self.head_size = head_size
        self.num_heads = dim // head_size
        self.pad_len_multiple = max(8, pad_len_multiple)

        ks = jax.random.split(key, 12)
        s = 0.02
        f32, bf16 = jnp.float32, jnp.bfloat16
        self.emb = jax.random.normal(ks[0], (4, dim), f32) * s

        # One encoder layer (nn.TransformerEncoder deep-copies it `depth` times,
        # so all layers share identical parameter values).  Matmul weights are
        # stored pre-transposed and in bf16; 1/sqrt(head_size) is baked into Wq/bq.
        wqkv = jax.random.normal(ks[1], (dim, 3 * dim), f32) * s      # in_proj_weight.T
        bqkv = jax.random.normal(ks[2], (1, 3 * dim), f32) * s        # in_proj_bias
        scale = 1.0 / math.sqrt(head_size)
        wqkv = wqkv.at[:, :dim].multiply(scale)
        bqkv = bqkv.at[:, :dim].multiply(scale)

        self.layer_params = [
            jnp.ones((1, dim), f32),                                    # norm1 gamma
            jnp.zeros((1, dim), f32),                                   # norm1 beta
            wqkv.astype(bf16),                                          # in_proj_weight.T (scaled q)
            bqkv,                                                       # in_proj_bias (scaled q)
            (jax.random.normal(ks[3], (dim, dim), f32) * s).astype(bf16),  # out_proj.weight.T
            jnp.zeros((1, dim), f32),                                   # out_proj.bias
            jnp.ones((1, dim), f32),                                    # norm2 gamma
            jnp.zeros((1, dim), f32),                                   # norm2 beta
            (jax.random.normal(ks[4], (dim, 4 * dim), f32) * s).astype(bf16),  # linear1.weight.T
            jax.random.normal(ks[5], (1, 4 * dim), f32) * s,            # linear1.bias
            (jax.random.normal(ks[6], (4 * dim, dim), f32) * s).astype(bf16),  # linear2.weight.T
            jax.random.normal(ks[7], (1, dim), f32) * s,                # linear2.bias
        ]

        # proj_out: Linear(dim, 2), padded to 128 output lanes for dense stores.
        w_out = jax.random.normal(ks[8], (dim, 2), f32) * s             # proj_out.weight.T
        b_out = jax.random.normal(ks[9], (1, 2), f32) * s               # proj_out.bias
        w_out_p = jnp.zeros((dim, OUT_LANE_PAD), f32).at[:, :2].set(w_out)
        b_out_p = jnp.zeros((1, OUT_LANE_PAD), f32).at[:, :2].set(b_out)
        self.out_params = [w_out_p.astype(bf16), b_out_p]

    def __call__(self, seq, mask):
        # TODO(synk): the data-dependent Lmax truncation requires a host sync
        # (dynamic shape); bucketing to pad_len_multiple keeps compiles cached.
        Lmax = int(np.asarray(jax.device_get(mask)).sum(-1).max())
        m = self.pad_len_multiple
        Lpad = max(m, ((Lmax + m - 1) // m) * m)

        seq_p = _fit_len(seq, Lpad, 0)           # pad with a valid token index
        mask_p = _fit_len(mask, Lpad, False)     # padded keys are masked out

        pos = sinusoidal_pos_emb(jnp.arange(Lpad)[None, :], self.dim)   # (1, Lpad, D)
        x = jnp.take(self.emb, seq_p, axis=0) + pos                     # (B, Lpad, D)

        # src_key_padding_mask = ~mask  ->  -1e30 additive bias on padded keys.
        key_bias = jnp.where(mask_p, 0.0, NEG_INF).astype(jnp.float32)[:, None, :]

        y = fused_encoder(x.astype(jnp.float32), key_bias,
                          self.layer_params, self.out_params,
                          self.depth, self.num_heads, self.head_size)
        return y[:, :Lmax, :2]                                          # (B, Lmax, 2)


# ----------------------------------------------------------------------------- main
if __name__ == "__main__":
    # Small, module-consistent config: dim=128, head_size=32 -> 4 heads, depth=2.
    B, Lin = 2, 16
    dim, depth, head_size = 128, 2, 32

    rng = jax.random.PRNGKey(0)
    k_seq, k_model = jax.random.split(rng)
    seq = jax.random.randint(k_seq, (B, Lin), 0, 4, dtype=jnp.int32)   # tokens in {0..3}
    lengths = jnp.array([12, 9], dtype=jnp.int32)
    mask = jnp.arange(Lin)[None, :] < lengths[:, None]                 # (B, Lin) bool

    model = RNAModelPallas(dim=dim, depth=depth, head_size=head_size, key=k_model)
    out = model(seq, mask)
    out = jax.block_until_ready(out)

    assert out.shape == (B, 12, 2), out.shape          # Lmax = 12
    assert bool(jnp.all(jnp.isfinite(out)))
    print("KERNEL_OK")
</pallas_src>

<mosaic_0001>
module attributes {stable_mosaic.version = 11 : i64} {
  func.func @fused_encoder_kernel(%arg0: i32, %arg1: i32, %arg2: memref<1x32x128xf32, #tpu.memory_space<vmem>>, %arg3: memref<1x1x32xf32, #tpu.memory_space<vmem>>, %arg4: memref<1x128xf32, #tpu.memory_space<vmem>>, %arg5: memref<1x128xf32, #tpu.memory_space<vmem>>, %arg6: memref<128x384xbf16, #tpu.memory_space<vmem>>, %arg7: memref<1x384xf32, #tpu.memory_space<vmem>>, %arg8: memref<128x128xbf16, #tpu.memory_space<vmem>>, %arg9: memref<1x128xf32, #tpu.memory_space<vmem>>, %arg10: memref<1x128xf32, #tpu.memory_space<vmem>>, %arg11: memref<1x128xf32, #tpu.memory_space<vmem>>, %arg12: memref<128x512xbf16, #tpu.memory_space<vmem>>, %arg13: memref<1x512xf32, #tpu.memory_space<vmem>>, %arg14: memref<512x128xbf16, #tpu.memory_space<vmem>>, %arg15: memref<1x128xf32, #tpu.memory_space<vmem>>, %arg16: memref<128x128xbf16, #tpu.memory_space<vmem>>, %arg17: memref<1x128xf32, #tpu.memory_space<vmem>>, %arg18: memref<1x32x128xf32, #tpu.memory_space<vmem>>, %arg19: memref<32x128xf32, #tpu.memory_space<vmem>>) attributes {dimension_semantics = [#tpu.dimension_semantics<parallel>, #tpu.dimension_semantics<arbitrary>], iteration_bounds = array<i64: 2, 2>, scalar_prefetch = 0 : i64, scratch_operands = 1 : i64, tpu.core_type = #tpu.core_type<tc>, window_params = [{transform_indices = @transform_0, window_bounds = array<i64: 1, 32, 128>}, {transform_indices = @transform_1, window_bounds = array<i64: 1, 1, 32>}, {pipeline_mode = #tpu.pipeline_mode<synchronous>, transform_indices = @transform_2, window_bounds = array<i64: 1, 128>}, {pipeline_mode = #tpu.pipeline_mode<synchronous>, transform_indices = @transform_3, window_bounds = array<i64: 1, 128>}, {pipeline_mode = #tpu.pipeline_mode<synchronous>, transform_indices = @transform_4, window_bounds = array<i64: 128, 384>}, {pipeline_mode = #tpu.pipeline_mode<synchronous>, transform_indices = @transform_5, window_bounds = array<i64: 1, 384>}, {pipeline_mode = #tpu.pipeline_mode<synchronous>, transform_indices = @transform_6, window_bounds = array<i64: 128, 128>}, {pipeline_mode = #tpu.pipeline_mode<synchronous>, transform_indices = @transform_7, window_bounds = array<i64: 1, 128>}, {pipeline_mode = #tpu.pipeline_mode<synchronous>, transform_indices = @transform_8, window_bounds = array<i64: 1, 128>}, {pipeline_mode = #tpu.pipeline_mode<synchronous>, transform_indices = @transform_9, window_bounds = array<i64: 1, 128>}, {pipeline_mode = #tpu.pipeline_mode<synchronous>, transform_indices = @transform_10, window_bounds = array<i64: 128, 512>}, {pipeline_mode = #tpu.pipeline_mode<synchronous>, transform_indices = @transform_11, window_bounds = array<i64: 1, 512>}, {pipeline_mode = #tpu.pipeline_mode<synchronous>, transform_indices = @transform_12, window_bounds = array<i64: 512, 128>}, {pipeline_mode = #tpu.pipeline_mode<synchronous>, transform_indices = @transform_13, window_bounds = array<i64: 1, 128>}, {pipeline_mode = #tpu.pipeline_mode<synchronous>, transform_indices = @transform_14, window_bounds = array<i64: 128, 128>}, {pipeline_mode = #tpu.pipeline_mode<synchronous>, transform_indices = @transform_15, window_bounds = array<i64: 1, 128>}, {transform_indices = @transform_16, window_bounds = array<i64: 1, 32, 128>}]} {
    %c0_i32 = arith.constant 0 : i32
    %0 = arith.cmpi eq, %arg1, %c0_i32 : i32
    %1 = arith.extui %0 : i1 to i32
    %c0_i32_0 = arith.constant 0 : i32
    %2 = arith.cmpi ne, %1, %c0_i32_0 : i32
    scf.if %2 {
      %c0_69 = arith.constant 0 : index
      %c0_70 = arith.constant 0 : index
      %c0_71 = arith.constant 0 : index
      %199 = vector.load %arg2[%c0_69, %c0_70, %c0_71] : memref<1x32x128xf32, #tpu.memory_space<vmem>>, vector<1x32x128xf32>
      %200 = vector.shape_cast %199 : vector<1x32x128xf32> to vector<32x128xf32>
      %c0_72 = arith.constant 0 : index
      %c0_73 = arith.constant 0 : index
      %201 = vector.load %arg19[%c0_72, %c0_73] : memref<32x128xf32, #tpu.memory_space<vmem>>, vector<32x128xf32>
      tpu.vector_store %arg19[%c0_72, %c0_73], %200 {strides = array<i32>} : memref<32x128xf32, #tpu.memory_space<vmem>>, vector<32x128xf32>,
    } else {
    }
    %c0 = arith.constant 0 : index
    %c0_1 = arith.constant 0 : index
    %3 = vector.load %arg19[%c0, %c0_1] : memref<32x128xf32, #tpu.memory_space<vmem>>, vector<32x128xf32>
    %c0_2 = arith.constant 0 : index
    %c0_3 = arith.constant 0 : index
    %c0_4 = arith.constant 0 : index
    %4 = vector.load %arg3[%c0_2, %c0_3, %c0_4] : memref<1x1x32xf32, #tpu.memory_space<vmem>>, vector<1x1x32xf32>
    %5 = vector.shape_cast %4 : vector<1x1x32xf32> to vector<1x32xf32>
    %c0_5 = arith.constant 0 : index
    %c0_6 = arith.constant 0 : index
    %6 = vector.load %arg4[%c0_5, %c0_6] : memref<1x128xf32, #tpu.memory_space<vmem>>, vector<1x128xf32>
    %c0_7 = arith.constant 0 : index
    %c0_8 = arith.constant 0 : index
    %7 = vector.load %arg5[%c0_7, %c0_8] : memref<1x128xf32, #tpu.memory_space<vmem>>, vector<1x128xf32>
    %cst = arith.constant dense<0.000000e+00> : vector<32xf32>
    %8 = vector.multi_reduction <add>, %3, %cst [1] : vector<32x128xf32> to vector<32xf32>
    %9 = vector.shape_cast %8 : vector<32xf32> to vector<32x1xf32>
    %cst_9 = arith.constant 1.280000e+02 : f32
    %10 = vector.broadcast %cst_9 : f32 to vector<32x1xf32>
    %11 = arith.divf %9, %10 : vector<32x1xf32>
    %12 = vector.broadcast %11 : vector<32x1xf32> to vector<32x128xf32>
    %13 = arith.subf %3, %12 : vector<32x128xf32>
    %14 = arith.mulf %13, %13 : vector<32x128xf32>
    %cst_10 = arith.constant dense<0.000000e+00> : vector<32xf32>
    %15 = vector.multi_reduction <add>, %14, %cst_10 [1] : vector<32x128xf32> to vector<32xf32>
    %16 = vector.shape_cast %15 : vector<32xf32> to vector<32x1xf32>
    %cst_11 = arith.constant 1.280000e+02 : f32
    %17 = vector.broadcast %cst_11 : f32 to vector<32x1xf32>
    %18 = arith.divf %16, %17 : vector<32x1xf32>
    %19 = vector.broadcast %11 : vector<32x1xf32> to vector<32x128xf32>
    %20 = arith.subf %3, %19 : vector<32x128xf32>
    %cst_12 = arith.constant 9.99999974E-6 : f32
    %21 = vector.broadcast %cst_12 : f32 to vector<32x1xf32>
    %22 = arith.addf %18, %21 : vector<32x1xf32>
    %23 = math.rsqrt %22 : vector<32x1xf32>
    %24 = vector.broadcast %23 : vector<32x1xf32> to vector<32x128xf32>
    %25 = arith.mulf %20, %24 : vector<32x128xf32>
    %26 = vector.broadcast %6 : vector<1x128xf32> to vector<32x128xf32>
    %27 = arith.mulf %25, %26 : vector<32x128xf32>
    %28 = vector.broadcast %7 : vector<1x128xf32> to vector<32x128xf32>
    %29 = arith.addf %27, %28 : vector<32x128xf32>
    %30 = arith.truncf %29 : vector<32x128xf32> to vector<32x128xbf16>
    %c0_13 = arith.constant 0 : index
    %c0_14 = arith.constant 0 : index
    %31 = vector.load %arg6[%c0_13, %c0_14] : memref<128x384xbf16, #tpu.memory_space<vmem>>, vector<128x384xbf16>
    %cst_15 = arith.constant dense<0.000000e+00> : vector<32x384xf32>
    %32 = tpu.matmul %30, %31, %cst_15 {dimension_numbers = #tpu.dot_dimension_numbers<[1], [0], [0], [1], [0, 0, 1, 1], [], []>} : vector<32x128xbf16>, vector<128x384xbf16>, vector<32x384xf32> -> vector<32x384xf32>
    %c0_16 = arith.constant 0 : index
    %c0_17 = arith.constant 0 : index
    %33 = vector.load %arg7[%c0_16, %c0_17] : memref<1x384xf32, #tpu.memory_space<vmem>>, vector<1x384xf32>
    %34 = vector.broadcast %33 : vector<1x384xf32> to vector<32x384xf32>
    %35 = arith.addf %32, %34 : vector<32x384xf32>
    %36 = vector.extract_strided_slice %35 {offsets = [0, 0], sizes = [32, 128], strides = [1, 1]} : vector<32x384xf32> to vector<32x128xf32>
    %37 = vector.extract_strided_slice %35 {offsets = [0, 128], sizes = [32, 128], strides = [1, 1]} : vector<32x384xf32> to vector<32x128xf32>
    %38 = vector.extract_strided_slice %35 {offsets = [0, 256], sizes = [32, 128], strides = [1, 1]} : vector<32x384xf32> to vector<32x128xf32>
    %c0_18 = arith.constant 0 : index
    %c0_19 = arith.constant 0 : index
    %39 = vector.load %arg8[%c0_18, %c0_19] : memref<128x128xbf16, #tpu.memory_space<vmem>>, vector<128x128xbf16>
    %cst_20 = arith.constant 0.000000e+00 : f32
    %40 = vector.broadcast %cst_20 : f32 to vector<32x128xf32>
    %41 = vector.extract_strided_slice %36 {offsets = [0, 0], sizes = [32, 32], strides = [1, 1]} : vector<32x128xf32> to vector<32x32xf32>
    %42 = arith.truncf %41 : vector<32x32xf32> to vector<32x32xbf16>
    %43 = vector.extract_strided_slice %37 {offsets = [0, 0], sizes = [32, 32], strides = [1, 1]} : vector<32x128xf32> to vector<32x32xf32>
    %44 = arith.truncf %43 : vector<32x32xf32> to vector<32x32xbf16>
    %45 = vector.extract_strided_slice %38 {offsets = [0, 0], sizes = [32, 32], strides = [1, 1]} : vector<32x128xf32> to vector<32x32xf32>
    %46 = arith.truncf %45 : vector<32x32xf32> to vector<32x32xbf16>
    %cst_21 = arith.constant dense<0.000000e+00> : vector<32x32xf32>
    %47 = tpu.matmul %42, %44, %cst_21 {dimension_numbers = #tpu.dot_dimension_numbers<[1], [1], [0], [0], [0, 0, 1, 0], [], []>} : vector<32x32xbf16>, vector<32x32xbf16>, vector<32x32xf32> -> vector<32x32xf32>
    %48 = vector.broadcast %5 : vector<1x32xf32> to vector<32x32xf32>
    %49 = arith.addf %47, %48 : vector<32x32xf32>
    %cst_22 = arith.constant dense<0xFF800000> : vector<32xf32>
    %50 = vector.multi_reduction <maximumf>, %49, %cst_22 [1] : vector<32x32xf32> to vector<32xf32>
    %51 = vector.shape_cast %50 : vector<32xf32> to vector<32x1xf32>
    %52 = vector.broadcast %51 : vector<32x1xf32> to vector<32x32xf32>
    %53 = arith.subf %49, %52 : vector<32x32xf32>
    %54 = math.exp %53 : vector<32x32xf32>
    %cst_23 = arith.constant dense<0.000000e+00> : vector<32xf32>
    %55 = vector.multi_reduction <add>, %54, %cst_23 [1] : vector<32x32xf32> to vector<32xf32>
    %56 = vector.shape_cast %55 : vector<32xf32> to vector<32x1xf32>
    %57 = tpu.reciprocal %56 {approx = true} : vector<32x1xf32> -> vector<32x1xf32>
    %58 = vector.broadcast %57 : vector<32x1xf32> to vector<32x32xf32>
    %59 = arith.mulf %54, %58 : vector<32x32xf32>
    %60 = arith.truncf %59 : vector<32x32xf32> to vector<32x32xbf16>
    %cst_24 = arith.constant dense<0.000000e+00> : vector<32x32xf32>
    %61 = tpu.matmul %60, %46, %cst_24 {dimension_numbers = #tpu.dot_dimension_numbers<[1], [0], [0], [1], [0, 0, 1, 1], [], []>} : vector<32x32xbf16>, vector<32x32xbf16>, vector<32x32xf32> -> vector<32x32xf32>
    %62 = arith.truncf %61 : vector<32x32xf32> to vector<32x32xbf16>
    %63 = vector.extract_strided_slice %39 {offsets = [0, 0], sizes = [32, 128], strides = [1, 1]} : vector<128x128xbf16> to vector<32x128xbf16>
    %cst_25 = arith.constant dense<0.000000e+00> : vector<32x128xf32>
    %64 = tpu.matmul %62, %63, %cst_25 {dimension_numbers = #tpu.dot_dimension_numbers<[1], [0], [0], [1], [0, 0, 1, 1], [], []>} : vector<32x32xbf16>, vector<32x128xbf16>, vector<32x128xf32> -> vector<32x128xf32>
    %65 = arith.addf %40, %64 : vector<32x128xf32>
    %66 = vector.extract_strided_slice %36 {offsets = [0, 32], sizes = [32, 32], strides = [1, 1]} : vector<32x128xf32> to vector<32x32xf32>
    %67 = arith.truncf %66 : vector<32x32xf32> to vector<32x32xbf16>
    %68 = vector.extract_strided_slice %37 {offsets = [0, 32], sizes = [32, 32], strides = [1, 1]} : vector<32x128xf32> to vector<32x32xf32>
    %69 = arith.truncf %68 : vector<32x32xf32> to vector<32x32xbf16>
    %70 = vector.extract_strided_slice %38 {offsets = [0, 32], sizes = [32, 32], strides = [1, 1]} : vector<32x128xf32> to vector<32x32xf32>
    %71 = arith.truncf %70 : vector<32x32xf32> to vector<32x32xbf16>
    %cst_26 = arith.constant dense<0.000000e+00> : vector<32x32xf32>
    %72 = tpu.matmul %67, %69, %cst_26 {dimension_numbers = #tpu.dot_dimension_numbers<[1], [1], [0], [0], [0, 0, 1, 0], [], []>} : vector<32x32xbf16>, vector<32x32xbf16>, vector<32x32xf32> -> vector<32x32xf32>
    %73 = vector.broadcast %5 : vector<1x32xf32> to vector<32x32xf32>
    %74 = arith.addf %72, %73 : vector<32x32xf32>
    %cst_27 = arith.constant dense<0xFF800000> : vector<32xf32>
    %75 = vector.multi_reduction <maximumf>, %74, %cst_27 [1] : vector<32x32xf32> to vector<32xf32>
    %76 = vector.shape_cast %75 : vector<32xf32> to vector<32x1xf32>
    %77 = vector.broadcast %76 : vector<32x1xf32> to vector<32x32xf32>
    %78 = arith.subf %74, %77 : vector<32x32xf32>
    %79 = math.exp %78 : vector<32x32xf32>
    %cst_28 = arith.constant dense<0.000000e+00> : vector<32xf32>
    %80 = vector.multi_reduction <add>, %79, %cst_28 [1] : vector<32x32xf32> to vector<32xf32>
    %81 = vector.shape_cast %80 : vector<32xf32> to vector<32x1xf32>
    %82 = tpu.reciprocal %81 {approx = true} : vector<32x1xf32> -> vector<32x1xf32>
    %83 = vector.broadcast %82 : vector<32x1xf32> to vector<32x32xf32>
    %84 = arith.mulf %79, %83 : vector<32x32xf32>
    %85 = arith.truncf %84 : vector<32x32xf32> to vector<32x32xbf16>
    %cst_29 = arith.constant dense<0.000000e+00> : vector<32x32xf32>
    %86 = tpu.matmul %85, %71, %cst_29 {dimension_numbers = #tpu.dot_dimension_numbers<[1], [0], [0], [1], [0, 0, 1, 1], [], []>} : vector<32x32xbf16>, vector<32x32xbf16>, vector<32x32xf32> -> vector<32x32xf32>
    %87 = arith.truncf %86 : vector<32x32xf32> to vector<32x32xbf16>
    %88 = vector.extract_strided_slice %39 {offsets = [32, 0], sizes = [32, 128], strides = [1, 1]} : vector<128x128xbf16> to vector<32x128xbf16>
    %cst_30 = arith.constant dense<0.000000e+00> : vector<32x128xf32>
    %89 = tpu.matmul %87, %88, %cst_30 {dimension_numbers = #tpu.dot_dimension_numbers<[1], [0], [0], [1], [0, 0, 1, 1], [], []>} : vector<32x32xbf16>, vector<32x128xbf16>, vector<32x128xf32> -> vector<32x128xf32>
    %90 = arith.addf %65, %89 : vector<32x128xf32>
    %91 = vector.extract_strided_slice %36 {offsets = [0, 64], sizes = [32, 32], strides = [1, 1]} : vector<32x128xf32> to vector<32x32xf32>
    %92 = arith.truncf %91 : vector<32x32xf32> to vector<32x32xbf16>
    %93 = vector.extract_strided_slice %37 {offsets = [0, 64], sizes = [32, 32], strides = [1, 1]} : vector<32x128xf32> to vector<32x32xf32>
    %94 = arith.truncf %93 : vector<32x32xf32> to vector<32x32xbf16>
    %95 = vector.extract_strided_slice %38 {offsets = [0, 64], sizes = [32, 32], strides = [1, 1]} : vector<32x128xf32> to vector<32x32xf32>
    %96 = arith.truncf %95 : vector<32x32xf32> to vector<32x32xbf16>
    %cst_31 = arith.constant dense<0.000000e+00> : vector<32x32xf32>
    %97 = tpu.matmul %92, %94, %cst_31 {dimension_numbers = #tpu.dot_dimension_numbers<[1], [1], [0], [0], [0, 0, 1, 0], [], []>} : vector<32x32xbf16>, vector<32x32xbf16>, vector<32x32xf32> -> vector<32x32xf32>
    %98 = vector.broadcast %5 : vector<1x32xf32> to vector<32x32xf32>
    %99 = arith.addf %97, %98 : vector<32x32xf32>
    %cst_32 = arith.constant dense<0xFF800000> : vector<32xf32>
    %100 = vector.multi_reduction <maximumf>, %99, %cst_32 [1] : vector<32x32xf32> to vector<32xf32>
    %101 = vector.shape_cast %100 : vector<32xf32> to vector<32x1xf32>
    %102 = vector.broadcast %101 : vector<32x1xf32> to vector<32x32xf32>
    %103 = arith.subf %99, %102 : vector<32x32xf32>
    %104 = math.exp %103 : vector<32x32xf32>
    %cst_33 = arith.constant dense<0.000000e+00> : vector<32xf32>
    %105 = vector.multi_reduction <add>, %104, %cst_33 [1] : vector<32x32xf32> to vector<32xf32>
    %106 = vector.shape_cast %105 : vector<32xf32> to vector<32x1xf32>
    %107 = tpu.reciprocal %106 {approx = true} : vector<32x1xf32> -> vector<32x1xf32>
    %108 = vector.broadcast %107 : vector<32x1xf32> to vector<32x32xf32>
    %109 = arith.mulf %104, %108 : vector<32x32xf32>
    %110 = arith.truncf %109 : vector<32x32xf32> to vector<32x32xbf16>
    %cst_34 = arith.constant dense<0.000000e+00> : vector<32x32xf32>
    %111 = tpu.matmul %110, %96, %cst_34 {dimension_numbers = #tpu.dot_dimension_numbers<[1], [0], [0], [1], [0, 0, 1, 1], [], []>} : vector<32x32xbf16>, vector<32x32xbf16>, vector<32x32xf32> -> vector<32x32xf32>
    %112 = arith.truncf %111 : vector<32x32xf32> to vector<32x32xbf16>
    %113 = vector.extract_strided_slice %39 {offsets = [64, 0], sizes = [32, 128], strides = [1, 1]} : vector<128x128xbf16> to vector<32x128xbf16>
    %cst_35 = arith.constant dense<0.000000e+00> : vector<32x128xf32>
    %114 = tpu.matmul %112, %113, %cst_35 {dimension_numbers = #tpu.dot_dimension_numbers<[1], [0], [0], [1], [0, 0, 1, 1], [], []>} : vector<32x32xbf16>, vector<32x128xbf16>, vector<32x128xf32> -> vector<32x128xf32>
    %115 = arith.addf %90, %114 : vector<32x128xf32>
    %116 = vector.extract_strided_slice %36 {offsets = [0, 96], sizes = [32, 32], strides = [1, 1]} : vector<32x128xf32> to vector<32x32xf32>
    %117 = arith.truncf %116 : vector<32x32xf32> to vector<32x32xbf16>
    %118 = vector.extract_strided_slice %37 {offsets = [0, 96], sizes = [32, 32], strides = [1, 1]} : vector<32x128xf32> to vector<32x32xf32>
    %119 = arith.truncf %118 : vector<32x32xf32> to vector<32x32xbf16>
    %120 = vector.extract_strided_slice %38 {offsets = [0, 96], sizes = [32, 32], strides = [1, 1]} : vector<32x128xf32> to vector<32x32xf32>
    %121 = arith.truncf %120 : vector<32x32xf32> to vector<32x32xbf16>
    %cst_36 = arith.constant dense<0.000000e+00> : vector<32x32xf32>
    %122 = tpu.matmul %117, %119, %cst_36 {dimension_numbers = #tpu.dot_dimension_numbers<[1], [1], [0], [0], [0, 0, 1, 0], [], []>} : vector<32x32xbf16>, vector<32x32xbf16>, vector<32x32xf32> -> vector<32x32xf32>
    %123 = vector.broadcast %5 : vector<1x32xf32> to vector<32x32xf32>
    %124 = arith.addf %122, %123 : vector<32x32xf32>
    %cst_37 = arith.constant dense<0xFF800000> : vector<32xf32>
    %125 = vector.multi_reduction <maximumf>, %124, %cst_37 [1] : vector<32x32xf32> to vector<32xf32>
    %126 = vector.shape_cast %125 : vector<32xf32> to vector<32x1xf32>
    %127 = vector.broadcast %126 : vector<32x1xf32> to vector<32x32xf32>
    %128 = arith.subf %124, %127 : vector<32x32xf32>
    %129 = math.exp %128 : vector<32x32xf32>
    %cst_38 = arith.constant dense<0.000000e+00> : vector<32xf32>
    %130 = vector.multi_reduction <add>, %129, %cst_38 [1] : vector<32x32xf32> to vector<32xf32>
    %131 = vector.shape_cast %130 : vector<32xf32> to vector<32x1xf32>
    %132 = tpu.reciprocal %131 {approx = true} : vector<32x1xf32> -> vector<32x1xf32>
    %133 = vector.broadcast %132 : vector<32x1xf32> to vector<32x32xf32>
    %134 = arith.mulf %129, %133 : vector<32x32xf32>
    %135 = arith.truncf %134 : vector<32x32xf32> to vector<32x32xbf16>
    %cst_39 = arith.constant dense<0.000000e+00> : vector<32x32xf32>
    %136 = tpu.matmul %135, %121, %cst_39 {dimension_numbers = #tpu.dot_dimension_numbers<[1], [0], [0], [1], [0, 0, 1, 1], [], []>} : vector<32x32xbf16>, vector<32x32xbf16>, vector<32x32xf32> -> vector<32x32xf32>
    %137 = arith.truncf %136 : vector<32x32xf32> to vector<32x32xbf16>
    %138 = vector.extract_strided_slice %39 {offsets = [96, 0], sizes = [32, 128], strides = [1, 1]} : vector<128x128xbf16> to vector<32x128xbf16>
    %cst_40 = arith.constant dense<0.000000e+00> : vector<32x128xf32>
    %139 = tpu.matmul %137, %138, %cst_40 {dimension_numbers = #tpu.dot_dimension_numbers<[1], [0], [0], [1], [0, 0, 1, 1], [], []>} : vector<32x32xbf16>, vector<32x128xbf16>, vector<32x128xf32> -> vector<32x128xf32>
    %140 = arith.addf %115, %139 : vector<32x128xf32>
    %141 = arith.addf %3, %140 : vector<32x128xf32>
    %c0_41 = arith.constant 0 : index
    %c0_42 = arith.constant 0 : index
    %142 = vector.load %arg9[%c0_41, %c0_42] : memref<1x128xf32, #tpu.memory_space<vmem>>, vector<1x128xf32>
    %143 = vector.broadcast %142 : vector<1x128xf32> to vector<32x128xf32>
    %144 = arith.addf %141, %143 : vector<32x128xf32>
    %c0_43 = arith.constant 0 : index
    %c0_44 = arith.constant 0 : index
    %145 = vector.load %arg10[%c0_43, %c0_44] : memref<1x128xf32, #tpu.memory_space<vmem>>, vector<1x128xf32>
    %c0_45 = arith.constant 0 : index
    %c0_46 = arith.constant 0 : index
    %146 = vector.load %arg11[%c0_45, %c0_46] : memref<1x128xf32, #tpu.memory_space<vmem>>, vector<1x128xf32>
    %cst_47 = arith.constant dense<0.000000e+00> : vector<32xf32>
    %147 = vector.multi_reduction <add>, %144, %cst_47 [1] : vector<32x128xf32> to vector<32xf32>
    %148 = vector.shape_cast %147 : vector<32xf32> to vector<32x1xf32>
    %cst_48 = arith.constant 1.280000e+02 : f32
    %149 = vector.broadcast %cst_48 : f32 to vector<32x1xf32>
    %150 = arith.divf %148, %149 : vector<32x1xf32>
    %151 = vector.broadcast %150 : vector<32x1xf32> to vector<32x128xf32>
    %152 = arith.subf %144, %151 : vector<32x128xf32>
    %153 = arith.mulf %152, %152 : vector<32x128xf32>
    %cst_49 = arith.constant dense<0.000000e+00> : vector<32xf32>
    %154 = vector.multi_reduction <add>, %153, %cst_49 [1] : vector<32x128xf32> to vector<32xf32>
    %155 = vector.shape_cast %154 : vector<32xf32> to vector<32x1xf32>
    %cst_50 = arith.constant 1.280000e+02 : f32
    %156 = vector.broadcast %cst_50 : f32 to vector<32x1xf32>
    %157 = arith.divf %155, %156 : vector<32x1xf32>
    %158 = vector.broadcast %150 : vector<32x1xf32> to vector<32x128xf32>
    %159 = arith.subf %144, %158 : vector<32x128xf32>
    %cst_51 = arith.constant 9.99999974E-6 : f32
    %160 = vector.broadcast %cst_51 : f32 to vector<32x1xf32>
    %161 = arith.addf %157, %160 : vector<32x1xf32>
    %162 = math.rsqrt %161 : vector<32x1xf32>
    %163 = vector.broadcast %162 : vector<32x1xf32> to vector<32x128xf32>
    %164 = arith.mulf %159, %163 : vector<32x128xf32>
    %165 = vector.broadcast %145 : vector<1x128xf32> to vector<32x128xf32>
    %166 = arith.mulf %164, %165 : vector<32x128xf32>
    %167 = vector.broadcast %146 : vector<1x128xf32> to vector<32x128xf32>
    %168 = arith.addf %166, %167 : vector<32x128xf32>
    %169 = arith.truncf %168 : vector<32x128xf32> to vector<32x128xbf16>
    %c0_52 = arith.constant 0 : index
    %c0_53 = arith.constant 0 : index
    %170 = vector.load %arg12[%c0_52, %c0_53] : memref<128x512xbf16, #tpu.memory_space<vmem>>, vector<128x512xbf16>
    %cst_54 = arith.constant dense<0.000000e+00> : vector<32x512xf32>
    %171 = tpu.matmul %169, %170, %cst_54 {dimension_numbers = #tpu.dot_dimension_numbers<[1], [0], [0], [1], [0, 0, 1, 1], [], []>} : vector<32x128xbf16>, vector<128x512xbf16>, vector<32x512xf32> -> vector<32x512xf32>
    %c0_55 = arith.constant 0 : index
    %c0_56 = arith.constant 0 : index
    %172 = vector.load %arg13[%c0_55, %c0_56] : memref<1x512xf32, #tpu.memory_space<vmem>>, vector<1x512xf32>
    %173 = vector.broadcast %172 : vector<1x512xf32> to vector<32x512xf32>
    %174 = arith.addf %171, %173 : vector<32x512xf32>
    %cst_57 = arith.constant 5.000000e-01 : f32
    %175 = vector.broadcast %cst_57 : f32 to vector<32x512xf32>
    %176 = arith.mulf %175, %174 : vector<32x512xf32>
    %cst_58 = arith.constant 4.471500e-02 : f32
    %177 = vector.broadcast %cst_58 : f32 to vector<32x512xf32>
    %178 = arith.mulf %177, %174 : vector<32x512xf32>
    %179 = arith.mulf %178, %174 : vector<32x512xf32>
    %180 = arith.mulf %179, %174 : vector<32x512xf32>
    %181 = arith.addf %174, %180 : vector<32x512xf32>
    %cst_59 = arith.constant 0.797884583 : f32
    %182 = vector.broadcast %cst_59 : f32 to vector<32x512xf32>
    %183 = arith.mulf %182, %181 : vector<32x512xf32>
    %184 = math.tanh %183 : vector<32x512xf32>
    %cst_60 = arith.constant 1.000000e+00 : f32
    %185 = vector.broadcast %cst_60 : f32 to vector<32x512xf32>
    %186 = arith.addf %185, %184 : vector<32x512xf32>
    %187 = arith.mulf %176, %186 : vector<32x512xf32>
    %188 = arith.truncf %187 : vector<32x512xf32> to vector<32x512xbf16>
    %c0_61 = arith.constant 0 : index
    %c0_62 = arith.constant 0 : index
    %189 = vector.load %arg14[%c0_61, %c0_62] : memref<512x128xbf16, #tpu.memory_space<vmem>>, vector<512x128xbf16>
    %cst_63 = arith.constant dense<0.000000e+00> : vector<32x128xf32>
    %190 = tpu.matmul %188, %189, %cst_63 {dimension_numbers = #tpu.dot_dimension_numbers<[1], [0], [0], [1], [0, 0, 1, 1], [], []>} : vector<32x512xbf16>, vector<512x128xbf16>, vector<32x128xf32> -> vector<32x128xf32>
    %c0_64 = arith.constant 0 : index
    %c0_65 = arith.constant 0 : index
    %191 = vector.load %arg15[%c0_64, %c0_65] : memref<1x128xf32, #tpu.memory_space<vmem>>, vector<1x128xf32>
    %192 = vector.broadcast %191 : vector<1x128xf32> to vector<32x128xf32>
    %193 = arith.addf %190, %192 : vector<32x128xf32>
    %194 = arith.addf %144, %193 : vector<32x128xf32>
    %c0_66 = arith.constant 0 : index
    %c0_67 = arith.constant 0 : index
    %195 = vector.load %arg19[%c0_66, %c0_67] : memref<32x128xf32, #tpu.memory_space<vmem>>, vector<32x128xf32>
    tpu.vector_store %arg19[%c0_66, %c0_67], %194 {strides = array<i32>} : memref<32x128xf32, #tpu.memory_space<vmem>>, vector<32x128xf32>,
    %c1_i32 = arith.constant 1 : i32
    %196 = arith.cmpi eq, %arg1, %c1_i32 : i32
    %197 = arith.extui %196 : i1 to i32
    %c0_i32_68 = arith.constant 0 : i32
    %198 = arith.cmpi ne, %197, %c0_i32_68 : i32
    scf.if %198 {
      %199 = arith.truncf %194 : vector<32x128xf32> to vector<32x128xbf16>
      %c0_69 = arith.constant 0 : index
      %c0_70 = arith.constant 0 : index
      %200 = vector.load %arg16[%c0_69, %c0_70] : memref<128x128xbf16, #tpu.memory_space<vmem>>, vector<128x128xbf16>
      %cst_71 = arith.constant dense<0.000000e+00> : vector<32x128xf32>
      %201 = tpu.matmul %199, %200, %cst_71 {dimension_numbers = #tpu.dot_dimension_numbers<[1], [0], [0], [1], [0, 0, 1, 1], [], []>} : vector<32x128xbf16>, vector<128x128xbf16>, vector<32x128xf32> -> vector<32x128xf32>
      %c0_72 = arith.constant 0 : index
      %c0_73 = arith.constant 0 : index
      %202 = vector.load %arg17[%c0_72, %c0_73] : memref<1x128xf32, #tpu.memory_space<vmem>>, vector<1x128xf32>
      %203 = vector.broadcast %202 : vector<1x128xf32> to vector<32x128xf32>
      %204 = arith.addf %201, %203 : vector<32x128xf32>
      %c0_74 = arith.constant 0 : index
      %c0_75 = arith.constant 0 : index
      %c0_76 = arith.constant 0 : index
      %205 = vector.load %arg18[%c0_74, %c0_75, %c0_76] : memref<1x32x128xf32, #tpu.memory_space<vmem>>, vector<1x32x128xf32>
      %206 = vector.shape_cast %205 : vector<1x32x128xf32> to vector<32x128xf32>
      %207 = vector.shape_cast %204 : vector<32x128xf32> to vector<1x32x128xf32>
      tpu.vector_store %arg18[%c0_74, %c0_75, %c0_76], %207 {strides = array<i32>} : memref<1x32x128xf32, #tpu.memory_space<vmem>>, vector<1x32x128xf32>,
    } else {
    }
    return
  }
  func.func @transform_0(%arg0: i32, %arg1: i32) -> (i32, i32, i32) {
    %c0_i32 = arith.constant 0 : i32
    %c0_i32_0 = arith.constant 0 : i32
    %c0_i32_1 = arith.constant 0 : i32
    return %arg0, %c0_i32, %c0_i32_0 : i32, i32, i32
  }
  func.func @transform_1(%arg0: i32, %arg1: i32) -> (i32, i32, i32) {
    %c0_i32 = arith.constant 0 : i32
    %c0_i32_0 = arith.constant 0 : i32
    %c0_i32_1 = arith.constant 0 : i32
    return %arg0, %c0_i32, %c0_i32_0 : i32, i32, i32
  }
  func.func @transform_2(%arg0: i32, %arg1: i32) -> (i32, i32) {
    %c0_i32 = arith.constant 0 : i32
    %c0_i32_0 = arith.constant 0 : i32
    %c0_i32_1 = arith.constant 0 : i32
    return %c0_i32, %c0_i32_0 : i32, i32
  }
  func.func @transform_3(%arg0: i32, %arg1: i32) -> (i32, i32) {
    %c0_i32 = arith.constant 0 : i32
    %c0_i32_0 = arith.constant 0 : i32
    %c0_i32_1 = arith.constant 0 : i32
    return %c0_i32, %c0_i32_0 : i32, i32
  }
  func.func @transform_4(%arg0: i32, %arg1: i32) -> (i32, i32) {
    %c0_i32 = arith.constant 0 : i32
    %c0_i32_0 = arith.constant 0 : i32
    %c0_i32_1 = arith.constant 0 : i32
    return %c0_i32, %c0_i32_0 : i32, i32
  }
  func.func @transform_5(%arg0: i32, %arg1: i32) -> (i32, i32) {
    %c0_i32 = arith.constant 0 : i32
    %c0_i32_0 = arith.constant 0 : i32
    %c0_i32_1 = arith.constant 0 : i32
    return %c0_i32, %c0_i32_0 : i32, i32
  }
  func.func @transform_6(%arg0: i32, %arg1: i32) -> (i32, i32) {
    %c0_i32 = arith.constant 0 : i32
    %c0_i32_0 = arith.constant 0 : i32
    %c0_i32_1 = arith.constant 0 : i32
    return %c0_i32, %c0_i32_0 : i32, i32
  }
  func.func @transform_7(%arg0: i32, %arg1: i32) -> (i32, i32) {
    %c0_i32 = arith.constant 0 : i32
    %c0_i32_0 = arith.constant 0 : i32
    %c0_i32_1 = arith.constant 0 : i32
    return %c0_i32, %c0_i32_0 : i32, i32
  }
  func.func @transform_8(%arg0: i32, %arg1: i32) -> (i32, i32) {
    %c0_i32 = arith.constant 0 : i32
    %c0_i32_0 = arith.constant 0 : i32
    %c0_i32_1 = arith.constant 0 : i32
    return %c0_i32, %c0_i32_0 : i32, i32
  }
  func.func @transform_9(%arg0: i32, %arg1: i32) -> (i32, i32) {
    %c0_i32 = arith.constant 0 : i32
    %c0_i32_0 = arith.constant 0 : i32
    %c0_i32_1 = arith.constant 0 : i32
    return %c0_i32, %c0_i32_0 : i32, i32
  }
  func.func @transform_10(%arg0: i32, %arg1: i32) -> (i32, i32) {
    %c0_i32 = arith.constant 0 : i32
    %c0_i32_0 = arith.constant 0 : i32
    %c0_i32_1 = arith.constant 0 : i32
    return %c0_i32, %c0_i32_0 : i32, i32
  }
  func.func @transform_11(%arg0: i32, %arg1: i32) -> (i32, i32) {
    %c0_i32 = arith.constant 0 : i32
    %c0_i32_0 = arith.constant 0 : i32
    %c0_i32_1 = arith.constant 0 : i32
    return %c0_i32, %c0_i32_0 : i32, i32
  }
  func.func @transform_12(%arg0: i32, %arg1: i32) -> (i32, i32) {
    %c0_i32 = arith.constant 0 : i32
    %c0_i32_0 = arith.constant 0 : i32
    %c0_i32_1 = arith.constant 0 : i32
    return %c0_i32, %c0_i32_0 : i32, i32
  }
  func.func @transform_13(%arg0: i32, %arg1: i32) -> (i32, i32) {
    %c0_i32 = arith.constant 0 : i32
    %c0_i32_0 = arith.constant 0 : i32
    %c0_i32_1 = arith.constant 0 : i32
    return %c0_i32, %c0_i32_0 : i32, i32
  }
  func.func @transform_14(%arg0: i32, %arg1: i32) -> (i32, i32) {
    %c0_i32 = arith.constant 0 : i32
    %c0_i32_0 = arith.constant 0 : i32
    %c0_i32_1 = arith.constant 0 : i32
    return %c0_i32, %c0_i32_0 : i32, i32
  }
  func.func @transform_15(%arg0: i32, %arg1: i32) -> (i32, i32) {
    %c0_i32 = arith.constant 0 : i32
    %c0_i32_0 = arith.constant 0 : i32
    %c0_i32_1 = arith.constant 0 : i32
    return %c0_i32, %c0_i32_0 : i32, i32
  }
  func.func @transform_16(%arg0: i32, %arg1: i32) -> (i32, i32, i32) {
    %c0_i32 = arith.constant 0 : i32
    %c0_i32_0 = arith.constant 0 : i32
    %c0_i32_1 = arith.constant 0 : i32
    return %arg0, %c0_i32, %c0_i32_0 : i32, i32, i32
  }
}

</mosaic_0001>

<bundles_post_ra>
// kernel: tpu_custom_call.1
= control target key start
LH: loop header
LB: loop body
LE: loop exit
PB: predicated region body
PF: predicated region fallthrough
CT: control target
= control target key end

     0   :  { %s5316_s0 = inlined_call_operand.hbm [shape: f32[2,32,128], index: 0, kind: input, shape index: {}]   ;;  %s5317_s1 = inlined_call_operand.hbm [shape: f32[2,1,32], index: 1, kind: input, shape index: {}]   ;;  %s5318_s2 = inlined_call_operand.hbm [shape: f32[1,128], index: 2, kind: input, shape index: {}]   ;;  %s5319_s3 = inlined_call_operand.hbm [shape: f32[1,128], index: 3, kind: input, shape index: {}]   ;;  %s5320_s4 = inlined_call_operand.hbm [shape: bf16[128,384], index: 4, kind: input, shape index: {}]   ;;  %s5321_s5 = inlined_call_operand.vmem [shape: f32[1,384], index: 5, kind: input, shape index: {}]   ;;  %s5322_s6 = inlined_call_operand.hbm [shape: bf16[128,128], index: 6, kind: input, shape index: {}]   ;;  %s5323_s7 = inlined_call_operand.vmem [shape: f32[1,128], index: 7, kind: input, shape index: {}]   ;;  %s5324_s8 = inlined_call_operand.vmem [shape: f32[1,128], index: 8, kind: input, shape index: {}]   ;;  %s5325_s9 = inlined_call_operand.vmem [shape: f32[1,128], index: 9, kind: input, shape index: {}]   ;;  %s5326_s10 = inlined_call_operand.hbm [shape: bf16[128,512], index: 10, kind: input, shape index: {}]   ;;  %s5327_s11 = inlined_call_operand.vmem [shape: f32[1,512], index: 11, kind: input, shape index: {}]   ;;  %s5328_s12 = inlined_call_operand.hbm [shape: bf16[512,128], index: 12, kind: input, shape index: {}]   ;;  %s5329_s13 = inlined_call_operand.vmem [shape: f32[1,128], index: 13, kind: input, shape index: {}]   ;;  %s5330_s14 = inlined_call_operand.hbm [shape: bf16[128,128], index: 14, kind: input, shape index: {}]   ;;  %s5331_s15 = inlined_call_operand.vmem [shape: f32[1,128], index: 15, kind: input, shape index: {}]   ;;  %s5332_s16 = inlined_call_operand.hbm [shape: f32[2,32,128], index: 16, kind: output, shape index: {}]  }
   0x1   :  { %5343 = sst [smem:[#allocation34_spill]] %s5316_s0 }
   0x2   :  { %5344 = sst [smem:[#allocation35_spill]] %s5318_s2 }
   0x3   :  { %5345 = sst [smem:[#allocation36_spill]] %s5319_s3 }
   0x4   :  { %5346 = sst [smem:[#allocation37_spill]] %s5320_s4 }
   0x5   :  { %5347 = sst [smem:[#allocation38_spill]] %s5322_s6 }
   0x6   :  { %5348 = sst [smem:[#allocation39_spill]] %s5325_s9 }
   0x7   :  { %5349 = sst [smem:[#allocation40_spill]] %s5326_s10 }
   0x8   :  { %5350 = sst [smem:[#allocation41_spill]] %s5327_s11 }
   0x9   :  { %5351 = sst [smem:[#allocation42_spill]] %s5328_s12 }
   0xa   :  { %5352 = sst [smem:[#allocation43_spill]] %s5329_s13 }
   0xb   :  { %5353 = sst [smem:[#allocation44_spill]] %s5330_s14 }
   0xc   :  { %5354 = sst [smem:[#allocation45_spill]] %s5331_s15 }
   0xd   :  { %5355 = sst [smem:[#allocation46_spill]] %s5332_s16 }
   0xe   :  { %21 = vsyncpa [#allocation4], 0 }
   0xf   :  { %23 = vsyncpa [#allocation4 + $0x1], 0 }
  0x10   :  { %24 = vsyncpa [#allocation7], 0 }
  0x11   :  { %26 = vsyncpa [#allocation7 + $0x1], 0 }
  0x12   :  { %27 = vsyncpa [#allocation10], 0 }
  0x13   :  { %28 = vsyncpa [#allocation13], 0 }
  0x14   :  { %29 = vsyncpa [#allocation16], 0 }
  0x15   :  { %30 = vsyncpa [#allocation5], 0 }
  0x16   :  { %32 = vsyncpa [#allocation5 + $0x1], 0  ;;  %s4611_s21 = smov 0   ;;  %s4613_s22 = smov 0  }
  0x17   :  { %s4615_s23 = smov 0   ;;  %s4617_s24 = smov 0  }
  0x18   :  { %s4619_s25 = smov 0   ;;  %s4621_s26 = smov 0  }
  0x19   :  { %s4623_s27 = smov 0   ;;  %s4625_s28 = smov 0  }
  0x1a LB: > { %5356 = sst [smem:[#allocation26_spill]] %s4472_s21  ;;  %s4652_s29 = sadd.s32 4294967295, %s4500_s28   ;;  %s4500_s28 = sphi %s4625_s28, %s38_s28   ;;  %s4496_s27 = sphi %s4623_s27, %s5408_s27   ;;  %s4492_s26 = sphi %s4621_s26, %s5403_s26   ;;  %s4488_s25 = sphi %s4619_s25, %s5407_s25   ;;  %s4484_s24 = sphi %s4617_s24, %s5402_s24   ;;  %s4480_s23 = sphi %s4615_s23, %s5401_s23   ;;  %s4476_s22 = sphi %s4613_s22, %s5406_s22   ;;  %s4472_s21 = sphi %s4611_s21, %s5405_s21  }
  0x1b   : > { %5357 = sst [smem:[#allocation27_spill]] %s4480_s23  ;;  %p3298_p0 = scmp.ge.s32.totalorder %s4500_s28, 1 }
  0x1c   : > { %5358 = sst [smem:[#allocation28_spill]] %s4488_s25  ;;  %p5334_p1 = scmp.eq.s32.totalorder %s4652_s29, 0 }
  0x1d   : > { %5359 = sst [smem:[#allocation29_spill]] %s4492_s26  ;;  %p427_p2 = scmp.lt.s32.totalorder %s4500_s28, 5 }
  0x1e   : > { %s4502_s0 = smov [#allocation8]   ;;  %s4503_s18 = smov [#allocation9]  }
  0x1f   : > { %p4657_p3 = pnand %p3298_p0, %p427_p2  ;;  %s440_s17 = sshll.u32 %s4502_s0, 4  ;;  %s441_s17 = int_to_ptr.vmem [resolvable:$true] %s440_s17 }
  0x20   : > { %s451_s19 = sshll.u32 %s4503_s18, 4  ;;  %s4504_s16 = smov [#allocation12]   ;;  %s452_s19 = int_to_ptr.vmem [resolvable:$true] %s451_s19 }
  0x21   : > { %s5360_s30 = scalar_select %p4657_p3, 1, 0 }
  0x22   : > { %p3768_p4 = pneg %p4657_p3  ;;  %s477_s25 = sshll.u32 %s4504_s16, 4  ;;  %s4669_s25 = int_to_ptr.vmem [resolvable:$true] %s477_s25 }
  0x23   : > { %s4157_s0 = scalar_lea.vmem %s441_s17, 16  ;;  %s4164_s18 = scalar_lea.vmem %s441_s17, 32 }
  0x24   : > { %p4665_p5 = pnand %p3768_p4, %p5334_p1  ;;  %p4158_p7 = scmp.ne.s32.totalorder %s441_s17, %s4157_s0 }
  0x25   : > { %p4165_p10 = scmp.lt.s32.totalorder %s441_s17, %s441_s17  ;;  %p4166_p11 = scmp.lt.s32.totalorder %s4164_s18, %s4157_s0 }
  0x26   : > { %p4673_p6 = pneg %p4665_p5 }
  0x27   : > { %p4167_p12 = por %p4166_p11, %p4165_p10 }
  0x28   : > { %p4160_p8 = pnand %p4158_p7, %p4673_p6 }
  0x2a   : > { %p4161_p9 = pneg %p4160_p8 }
  0x2c   : > { %p4168_p13 = pnand %p4167_p12, %p4161_p9 }
  0x2e   : > { %4171 = shalt.err (!%p4168_p13)
}
  0x2f   : > { %s5363_s2 = sld [smem:[#allocation35_spill]]  ;;  %s4183_s11 = scalar_lea.vmem %s452_s19, 16 }
  0x30   : > { %p4184_p0 = scmp.ne.s32.totalorder %s452_s19, %s4183_s11  ;;  %s4190_s9 = scalar_lea.vmem %s452_s19, 32 }
  0x31   : > { %p4191_p7 = scmp.lt.s32.totalorder %s452_s19, %s452_s19  ;;  %p4192_p8 = scmp.lt.s32.totalorder %s4190_s9, %s4183_s11 }
  0x32   : > { %p4186_p2 = pnand %p4184_p0, %p4673_p6 }
  0x33   : > { %p4193_p1 = por %p4192_p8, %p4191_p7 }
  0x34   : > { %p4187_p4 = pneg %p4186_p2 }
  0x35   : > { %3771 = dma.hbm_to_vmem [thread:$0]  (!%p4665_p5), %s5363_s2, 16, %s441_s17, [#allocation7]  }
  0x36   : > { %p4194_p3 = pnand %p4193_p1, %p4187_p4 }
  0x38   : > { %4197 = shalt.err (!%p4194_p3)
}
  0x39   : > { %s5364_s3 = sld [smem:[#allocation36_spill]]  ;;  %s4209_s13 = scalar_lea.vmem %s4669_s25, 1024 }
  0x3a   : > { %p4210_p9 = scmp.ne.s32.totalorder %s4669_s25, %s4209_s13  ;;  %p4217_p12 = scmp.lt.s32.totalorder %s4669_s25, %s4669_s25 }
  0x3b   : > { %p4218_p13 = scmp.lt.s32.totalorder %s4209_s13, %s4209_s13 }
  0x3c   : > { %p4212_p10 = pnand %p4210_p9, %p4673_p6 }
  0x3d   : > { %p4219_p1 = por %p4218_p13, %p4217_p12 }
  0x3e   : > { %p4213_p11 = pneg %p4212_p10 }
  0x3f   : > { %3774 = dma.hbm_to_vmem [thread:$0]  (!%p4665_p5), %s5364_s3, 16, %s452_s19, [#allocation10]  }
  0x40   : > { %p4220_p3 = pnand %p4219_p1, %p4213_p11 }
  0x42   : > { %4223 = shalt.err (!%p4220_p3)
}
  0x43   : > { %s5336_s9 = smov 64   ;;  %s5337_s11 = smov 4  }
  0x44   : > { %s5365_s6 = sld [smem:[#allocation38_spill]]  ;;  %s4507_s16 = smov [#allocation15]  }
  0x45   : > { %s515_s0 = sshll.u32 %s4507_s16, 4  ;;  %s4508_s18 = smov [#allocation11]   ;;  %s516_s0 = int_to_ptr.vmem [resolvable:$true] %s515_s0 }
  0x46   : > { %s461_s13 = sshll.u32 %s4508_s18, 4  ;;  %s4235_s2 = scalar_lea.vmem %s516_s0, 4096  ;;  %s462_s13 = int_to_ptr.vmem [resolvable:$true] %s461_s13 }
  0x47   : > { %p4236_p0 = scmp.ne.s32.totalorder %s516_s0, %s4235_s2  ;;  %p4243_p7 = scmp.lt.s32.totalorder %s516_s0, %s516_s0 }
  0x48   : > { %p4244_p8 = scmp.lt.s32.totalorder %s4235_s2, %s4235_s2 }
  0x49   : > { %p4238_p2 = pnand %p4236_p0, %p4673_p6 }
  0x4a   : > { %3780 = dma.hbm_to_vmem [thread:$0]  (!%p4665_p5), %s5365_s6, 1024, %s4669_s25, [#allocation13], %s5336_s9, %s5336_s9, %s5337_s11  }
  0x4b   : > { %p4239_p4 = pneg %p4238_p2  ;;  %p4245_p9 = por %p4244_p8, %p4243_p7 }
  0x4d   : > { %p4246_p10 = pnand %p4245_p9, %p4239_p4 }
  0x4f   : > { %4249 = shalt.err (!%p4246_p10)
}
  0x50   : > { %s5366_s12 = sld [smem:[#allocation42_spill]]  ;;  %s4261_s19 = scalar_lea.vmem %s462_s13, 3072 }
  0x51   : > { %p4262_p11 = scmp.ne.s32.totalorder %s462_s13, %s4261_s19  ;;  %p4269_p1 = scmp.lt.s32.totalorder %s462_s13, %s462_s13 }
  0x52   : > { %p4270_p3 = scmp.lt.s32.totalorder %s4261_s19, %s4261_s19 }
  0x53   : > { %p4264_p12 = pnand %p4262_p11, %p4673_p6 }
  0x54   : > { %p4271_p0 = por %p4270_p3, %p4269_p1 }
  0x55   : > { %p4265_p13 = pneg %p4264_p12 }
  0x56   : > { %3786 = dma.hbm_to_vmem [thread:$0]  (!%p4665_p5), %s5366_s12, 4096, %s516_s0, [#allocation16], %s5336_s9, %s5336_s9, %s5337_s11  }
  0x57   : > { %p4272_p2 = pnand %p4271_p0, %p4265_p13 }
  0x59   : > { %4275 = shalt.err (!%p4272_p2)
}
  0x5a   : > { %s4509_s2 = smov 192   ;;  %s4510_s16 = smov 12  }
  0x5b   : > { %s5367_s4 = sld [smem:[#allocation37_spill]]  ;;  %s4511_s0 = smov [#allocation14]  }
  0x5c   : > { %s499_s17 = sshll.u32 %s4511_s0, 4  ;;  %s500_s17 = int_to_ptr.vmem [resolvable:$true] %s499_s17 }
  0x5d   : > { %s4287_s9 = scalar_lea.vmem %s500_s17, 4096  ;;  %p4295_p9 = scmp.lt.s32.totalorder %s500_s17, %s500_s17 }
  0x5e   : > { %p4288_p4 = scmp.ne.s32.totalorder %s500_s17, %s4287_s9  ;;  %p4296_p10 = scmp.lt.s32.totalorder %s4287_s9, %s4287_s9 }
  0x60   : > { %p4290_p7 = pnand %p4288_p4, %p4673_p6  ;;  %p4297_p11 = por %p4296_p10, %p4295_p9 }
  0x61   : > { %3777 = dma.hbm_to_vmem [thread:$0]  (!%p4665_p5), %s5367_s4, 3072, %s462_s13, [#allocation10], %s4509_s2, %s4509_s2, %s4510_s16  }
  0x62   : > { %p4291_p8 = pneg %p4290_p7 }
  0x64   : > { %p4298_p12 = pnand %p4297_p11, %p4291_p8 }
  0x66   : > { %4301 = shalt.err (!%p4298_p12)
}
  0x67   : > { %s4512_s19 = smov 256   ;;  %s4513_s11 = smov 16  }
  0x68   : > { %s5368_s10 = sld [smem:[#allocation40_spill]]  ;;  %s4514_s2 = smov [#allocation17]  }
  0x69   : > { %s531_s16 = sshll.u32 %s4514_s2, 4  ;;  %s532_s16 = int_to_ptr.vmem [resolvable:$true] %s531_s16 }
  0x6a   : > { %s4313_s25 = scalar_lea.vmem %s532_s16, 1024  ;;  %p4321_p0 = scmp.lt.s32.totalorder %s532_s16, %s532_s16 }
  0x6b   : > { %p4314_p13 = scmp.ne.s32.totalorder %s532_s16, %s4313_s25  ;;  %p4322_p2 = scmp.lt.s32.totalorder %s4313_s25, %s4313_s25 }
  0x6d   : > { %p4316_p1 = pnand %p4314_p13, %p4673_p6  ;;  %p4323_p4 = por %p4322_p2, %p4321_p0 }
  0x6e   : > { %3783 = dma.hbm_to_vmem [thread:$0]  (!%p4665_p5), %s5368_s10, 4096, %s500_s17, [#allocation13], %s4512_s19, %s4512_s19, %s4513_s11  }
  0x6f   : > { %p4317_p3 = pneg %p4316_p1 }
  0x71   : > { %p4324_p7 = pnand %p4323_p4, %p4317_p3 }
  0x73   : > { %4327 = shalt.err (!%p4324_p7)
}
  0x74   : > { %s5369_s9 = smov 4   ;;  %s5370_s0 = smov 64  }
  0x75   : > { %s5371_s14 = sld [smem:[#allocation44_spill]]  ;;  %s3297_s15 = sadd.s32 4294967294, %s4500_s28  }
  0x76   : > { %s47_s20 = sadd.s32 1, %s4492_s26  ;;  %s50_s17 = sadd.s32 1, %s4496_s27 }
  0x77   : > { %p48_p6 = scmp.ge.s32.totalorder %s47_s20, 2  ;;  %s57_s19 = sadd.s32 1, %s4480_s23 }
  0x78   : > { %p64_p8 = scmp.ne.s32.totalorder %s4480_s23, %s4476_s22  ;;  %p65_p9 = scmp.eq.s32.totalorder %s4500_s28, 0 }
  0x79   : > { %s5410_s20 = smov (%p48_p6, %s47_s20), 0  ;;  %s5412_s17 = smov (!%p48_p6, %s50_s17), %s4496_s27 }
  0x7a   : > { %5372 = sst [smem:[#allocation30_spill]] %s5410_s20  ;;  %p4750_p10 = por %p65_p9, %p64_p8 }
  0x7b   : > { %3789 = dma.hbm_to_vmem [thread:$0]  (!%p4665_p5), %s5371_s14, 1024, %s532_s16, [#allocation16], %s5370_s0, %s5370_s0, %s5369_s9  }
  0x7c   : > { %p70_p5 = scmp.ne.s32.totalorder %s4476_s22, %s4472_s21  ;;  %p52_p11 = scmp.ge.s32.totalorder %s5412_s17, 2 }
  0x7d   : > { %p414_p12 = scmp.eq.s32.totalorder %s4652_s29, 3  ;;  %p5374_p13 = scmp.eq.s32.totalorder %s4652_s29, 0 }
  0x7e   : > { %p420_p3 = scmp.eq.s32.totalorder %s3297_s15, 3  ;;  %s5414_s17 = smov (%p52_p11, %s5412_s17), 0 }
  0x7f   : > { %p4759_p1 = por %p5374_p13, %p70_p5  ;;  %5376 = sst [smem:[#allocation31_spill]] %s5414_s17 }
  0x80   : > { %p4765_p0 = por %p414_p12, %p64_p8  ;;  %p4769_p2 = por %p420_p3, %p70_p5 }
  0x81   : > { %s54_s9 = ssub.s32 %s4496_s27, %s5414_s17  ;;  %p3808_p4 = scmp.lt.s32.totalorder %s4500_s28, 4 }
  0x82   : > { %s5378_s25 = scalar_select %p4769_p2, 1, 0 }
  0x83   : > { %p55_p7 = scmp.eq.s32.totalorder %s54_s9, 0  ;;  %s4777_s0 = sand.u32 1, %s4480_s23  }
  0x84   : > { %5379 = sst [smem:[#allocation32_spill]] %s5378_s25  ;;  %s3307_s18 = sshll.u32 %s4777_s0, 5 }
  0x85   : > { %s4781_s11 = scalar_select %p55_p7, %s4480_s23, %s57_s19  }
  0x86   : > { %s3464_s15 = sshll.u32 %s4496_s27, 9  ;;  %s5381_s6 = sld [smem:[#allocation34_spill]] }
  0x87   : > { %5380 = sst [smem:[#allocation33_spill]] %s4781_s11  ;;  %s552_s12 = scalar_lea.vmem [#allocation3], %s3307_s18 }
  0x88   : > { %s559_s14 = sshll.u32 %s552_s12, 4  ;;  %p4789_p6 = pnand %p3808_p4, %p4750_p10  ;;  %s560_s14 = int_to_ptr.vmem [resolvable:$true] %s559_s14 }
  0x89   : > { %s569_s9 = sand.u32 1, %s4500_s28   ;;  %s549_s20 = scalar_lea.sflag [#allocation4], %s4777_s0 }
  0x8a   : > { %p4330_p8 = pneg %p4789_p6  ;;  %s4341_s19 = scalar_lea.vmem %s560_s14, 512 }
  0x8b   : > { %p4342_p9 = scmp.ne.s32.totalorder %s560_s14, %s4341_s19  ;;  %s4515_s3 = smov [#allocation3]  }
  0x8c   : > { %s558_s10 = scalar_lea.hbm %s5381_s6, %s3464_s15  ;;  %s4346_s4 = sshll.u32 %s4515_s3, 4  ;;  %s4347_s4 = int_to_ptr.vmem [resolvable:$false] %s4346_s4 }
  0x8d   : > { %p4344_p5 = pnand %p4342_p9, %p4330_p8  ;;  %s4348_s6 = scalar_lea.vmem %s4347_s4, 1024 }
  0x8e   : > { %p4349_p10 = scmp.lt.s32.totalorder %s560_s14, %s4347_s4  ;;  %p4350_p12 = scmp.lt.s32.totalorder %s4348_s6, %s4341_s19 }
  0x8f   : > { %p4345_p11 = pneg %p4344_p5 }
  0x90   : > { %p4351_p13 = por %p4350_p12, %p4349_p10 }
  0x92   : > { %p4352_p3 = pnand %p4351_p13, %p4345_p11 }
  0x94   : > { %4355 = shalt.err (!%p4352_p3)
}
  0x95   : > { %s4516_s12 = smov 128   ;;  %s4517_s13 = smov 8  }
  0x96   : > { %3793 = dma.hbm_to_vmem [thread:$0]  (!%p4789_p6), %s558_s10, 512, %s560_s14, %s549_s20, %s4516_s12, %s4516_s12, %s4517_s13  }
  0x97   : > { %s3310_s18 = sshll.u32 %s4496_s27, 4  ;;  %s572_s15 = scalar_lea.vmem [#allocation6], %s4777_s0 }
  0x98   : > { %s579_s26 = sshll.u32 %s572_s15, 4  ;;  %s577_s23 = scalar_lea.hbm %s5317_s1, %s3310_s18  ;;  %s580_s26 = int_to_ptr.vmem [resolvable:$true] %s579_s26 }
  0x99   : > { %s570_s19 = scalar_lea.sflag [#allocation7], %s569_s9  ;;  %s4369_s4 = scalar_lea.vmem %s580_s26, 16 }
  0x9a   : > { %p4370_p4 = scmp.ne.s32.totalorder %s580_s26, %s4369_s4  ;;  %s4518_s6 = smov [#allocation6]  }
  0x9b   : > { %s4374_s25 = sshll.u32 %s4518_s6, 4  ;;  %s4375_s25 = int_to_ptr.vmem [resolvable:$false] %s4374_s25 }
  0x9c   : > { %p4372_p7 = pnand %p4370_p4, %p4330_p8  ;;  %s4376_s21 = scalar_lea.vmem %s4375_s25, 32 }
  0x9d   : > { %p4377_p5 = scmp.lt.s32.totalorder %s580_s26, %s4375_s25  ;;  %p4378_p11 = scmp.lt.s32.totalorder %s4376_s21, %s4369_s4 }
  0x9e   : > { %p4373_p9 = pneg %p4372_p7 }
  0x9f   : > { %p4379_p10 = por %p4378_p11, %p4377_p5 }
  0xa1   : > { %p4380_p12 = pnand %p4379_p10, %p4373_p9 }
  0xa3   : > { %4383 = shalt.err (!%p4380_p12)
}
  0xa4   : > { %3796 = dma.hbm_to_vmem [thread:$0]  (!%p4789_p6), %s577_s23, 16, %s580_s26, %s570_s19  }
  0xa5   : > { %p5383_p13 = scmp.ne.s32.totalorder %s5360_s30, 0 }
  0xa6   : > { %s4815_s10 = sand.u32 (!%p5383_p13), 1, %s4476_s22  }
  0xa7   : > { %588 = sbr.rel (%p5383_p13) target bundleno = 4192 (0x1060), region = 84  ;;  %s3312_s14 = sshll.u32 (!%p5383_p13), %s4815_s10, 5 }
  0xa8   : > { %s591_s20 = scalar_lea.sflag (!%p5383_p13), [#allocation4], %s4815_s10  ;;  %s594_s0 = scalar_lea.vmem (!%p5383_p13), [#allocation3], %s3312_s14 }
  0xac   : > { %4443 = dma.done.wait (%p4759_p1), %s591_s20, 512  }
  0xad   : > { %4445 = vsyncadd (%p4759_p1), %s591_s20, 4294966784  ;;  %s599_s21 = sand.u32 1, %s4652_s29   ;;  %s602_s26 = scalar_lea.vmem [#allocation6], %s4815_s10 }
  0xae   : > { %s600_s23 = scalar_lea.sflag [#allocation7], %s599_s21 }
  0xaf   : > { %4447 = dma.done.wait (%p4759_p1), %s600_s23, 16  }
  0xb0   : > { %4449 = vsyncadd (%p4759_p1), %s600_s23, 4294967280  ;;  %p5384_p6 = scmp.eq.s32.totalorder %s4652_s29, 0 }
  0xb2   : > { %4451 = dma.done.wait (%p5384_p6), [#allocation7], 16   ;;  %p5385_p8 = pmov %p5384_p6 }
  0xb3   : > { %p5386_p3 = pmov %p5384_p6 }
  0xb4   : > { %4453 = vsyncadd (%p5385_p8), [#allocation7], 4294967280 }
  0xb5   : > { %4455 = dma.done.wait (%p5386_p3), [#allocation10], 3088   ;;  %p5387_p4 = pmov %p5386_p3 }
  0xb6   : > { %p5388_p7 = pmov %p5386_p3 }
  0xb7   : > { %4457 = vsyncadd (%p5387_p4), [#allocation10], 4294964208 }
  0xb8   : > { %4459 = dma.done.wait (%p5388_p7), [#allocation13], 5120   ;;  %p5389_p9 = pmov %p5386_p3 }
  0xb9   : > { %p5390_p1 = pmov %p5386_p3 }
  0xba   : > { %4461 = vsyncadd (%p5389_p9), [#allocation13], 4294962176 }
  0xbb   : > { %4463 = dma.done.wait (%p5390_p1), [#allocation16], 5120   ;;  %p5391_p5 = pmov %p5390_p1 }
  0xbc   : > { %s4845_s30 = scalar_lea.vmem [#allocation18], %s3312_s14  ;;  %p3321_p11 = scmp.ne.s32.totalorder %s4484_s24, 0 }
  0xbd   : > { %4465 = vsyncadd (%p5391_p5), [#allocation16], 4294962176 }
  0xbe   : > { %687 = sbr.rel (%p3321_p11) target bundleno = 198 (0xc6), region = 124 }
  0xc3   : > { %v688_v0 = vld [vmem:[%s594_s0] sm:$0xff]  ;;  %v689_v1 = vld [vmem:[%s594_s0 + $0x8] sm:$0xff]  ;;  %v690_v2 = vld [vmem:[%s594_s0 + $0x10] sm:$0xff] }
  0xc4   : > { %692 = vst [vmem:[#allocation2 + $0x10] sm:$0xff] %v688_v0  ;;  %693 = vst [vmem:[#allocation2] sm:$0xff] %v689_v1  ;;  %v691_v3 = vld [vmem:[%s594_s0 + $0x18] sm:$0xff] }
  0xc5   : > { %694 = vst [vmem:[#allocation2 + $0x18] sm:$0xff] %v690_v2  ;;  %695 = vst [vmem:[#allocation2 + $0x8] sm:$0xff] %v691_v3 }
  0xc6 PF: > { %v3902_v8 = vld [vmem:[#allocation11 + $0xac] ss:$12 sps:$4 sm:$0xff]   ;;  %v3904_v9 = vld [vmem:[#allocation11 + $0xa8] ss:$12 sps:$4 sm:$0xff]   ;;  %v3907_v27 = vld [vmem:[#allocation11 + $0xb0] ss:$12 sps:$4 sm:$0xff]  }
  0xc7   : > { %947 = vmatprep.subr.bf16.mxu0 %v3902_v8  ;;  %v3905_v26 = vld [vmem:[#allocation11 + $0x94] ss:$12 sps:$4 sm:$0xff]   ;;  %v3908_v28 = vld [vmem:[#allocation11 + $0x90] ss:$12 sps:$4 sm:$0xff]   ;;  %3590 = vmatprep.subr.bf16.mxu1 %v3907_v27  ;;  %v3911_v30 = vld [vmem:[#allocation11 + $0x98] ss:$12 sps:$4 sm:$0xff]  }
  0xc8   : > { %948 = vmatpush1.bf16.msra.mxu0 %v3904_v9  ;;  %3591 = vmatpush3.bf16.msra.mxu1 %v3907_v27  ;;  %v3909_v29 = vld [vmem:[#allocation11 + $0x7c] ss:$12 sps:$4 sm:$0xff]   ;;  %v3912_v31 = vld [vmem:[#allocation11 + $0x78] ss:$12 sps:$4 sm:$0xff]   ;;  %v3915_v33 = vld [vmem:[#allocation11 + $0x80] ss:$12 sps:$4 sm:$0xff]  }
  0xc9   : > { %949 = vmatprep.subr.bf16.mxu0 %v3905_v26  ;;  %3592 = vmatprep.subr.bf16.mxu1 %v3911_v30  ;;  %v3913_v32 = vld [vmem:[#allocation11 + $0x64] ss:$12 sps:$4 sm:$0xff]   ;;  %v3916_v34 = vld [vmem:[#allocation11 + $0x60] ss:$12 sps:$4 sm:$0xff]   ;;  %v3919_v36 = vld [vmem:[#allocation11 + $0x68] ss:$12 sps:$4 sm:$0xff]  }
  0xca   : > { %v3917_v35 = vld [vmem:[#allocation11 + $0x4c] ss:$12 sps:$4 sm:$0xff]   ;;  %v3920_v37 = vld [vmem:[#allocation11 + $0x48] ss:$12 sps:$4 sm:$0xff]   ;;  %v3923_v39 = vld [vmem:[#allocation11 + $0x50] ss:$12 sps:$4 sm:$0xff]  }
  0xcb   : > { %v696_v4 = vld [vmem:[#allocation2 + $0x10] sm:$0xff]  ;;  %v697_v6 = vld [vmem:[#allocation2] sm:$0xff]  ;;  %v4519_v43 = vmov 0   ;;  %vm1077_vm0 = vcmask 261120   ;;  %s4520_s2 = smov 96   ;;  %s4521_s25 = smov 64  }
  0xcc   : > { %v698_v5 = vld [vmem:[#allocation2 + $0x18] sm:$0xff]  ;;  %703 = vadd.xlane.f32.xlu0 %v696_v4  ;;  %v699_v7 = vld [vmem:[#allocation2 + $0x8] sm:$0xff]  ;;  %950 = vmatpush1.bf16.msra.mxu0 %v3908_v28  ;;  %v3322_v63 = vld [vmem:[#allocation8] ss:$0 sm:$0xff]  ;;  %s4522_s11 = smov 32   ;;  %s5392_s19 = sld [smem:[#allocation39_spill]] }
  0xcd   : > { %707 = vadd.xlane.f32.xlu1 %v698_v5  ;;  %951 = vmatprep.subr.bf16.mxu0 %v3909_v29  ;;  %v3921_v38 = vld [vmem:[#allocation11 + $0x34] ss:$12 sps:$4 sm:$0xff]   ;;  %v3924_v40 = vld [vmem:[#allocation11 + $0x30] ss:$12 sps:$4 sm:$0xff]   ;;  %v3927_v42 = vld [vmem:[#allocation11 + $0x38] ss:$12 sps:$4 sm:$0xff]  }
  0xce   : > { %3593 = vmatpush3.bf16.msra.mxu1 %v3911_v30  ;;  %v3925_v41 = vld [vmem:[#allocation11 + $0x1c] ss:$12 sps:$4 sm:$0xff]   ;;  %979 = vmatprep.mubr.bf16.mxu0 %v4519_v43  ;;  %v3928_v44 = vld [vmem:[#allocation11 + $0x18] ss:$12 sps:$4 sm:$0xff]   ;;  %v3931_v46 = vld [vmem:[#allocation11 + $0x20] ss:$12 sps:$4 sm:$0xff]  }
  0xcf   : > { %3594 = vmatprep.subr.bf16.mxu1 %v3915_v33  ;;  %v3929_v45 = vld [vmem:[#allocation11 + $0x4] ss:$12 sps:$4 sm:$0xff]   ;;  %v3932_v47 = vld [vmem:[#allocation11] ss:$12 sps:$4 sm:$0xff]   ;;  %v3933_v48 = vld [vmem:[#allocation11 + $0x8] ss:$12 sps:$4 sm:$0xff]  }
  0xd0   : > { %705 = vadd.xlane.f32.xlu0 %v697_v6  ;;  %952 = vmatpush1.bf16.msra.mxu0 %v3912_v31  ;;  %s5393_s14 = sld [smem:[#allocation41_spill]]  ;;  %p3449_p10 = scmp.ne.s32.totalorder %s4484_s24, 1 }
  0xd1   : > { %709 = vadd.xlane.f32.xlu1 %v699_v7  ;;  %953 = vmatprep.subr.bf16.mxu0 %v3913_v32  ;;  %s5394_s21 = sld [smem:[#allocation43_spill]] }
  0xd2   : > { %3595 = vmatpush3.bf16.msra.mxu1 %v3915_v33 }
  0xd3   : > { %3596 = vmatprep.subr.bf16.mxu1 %v3919_v36 }
  0xd4   : > { %954 = vmatpush1.bf16.msra.mxu0 %v3916_v34 }
  0xd5   : > { %955 = vmatprep.subr.bf16.mxu0 %v3917_v35 }
  0xd6   : > { %3597 = vmatpush3.bf16.msra.mxu1 %v3919_v36 }
  0xd7   : > { %3598 = vmatprep.subr.bf16.mxu1 %v3923_v39 }
  0xd8   : > { %956 = vmatpush1.bf16.msra.mxu0 %v3920_v37 }
  0xd9   : > { %957 = vmatprep.subr.bf16.mxu0 %v3921_v38 }
  0xda   : > { %3599 = vmatpush3.bf16.msra.mxu1 %v3923_v39 }
  0xdb   : > { %3600 = vmatprep.subr.bf16.mxu1 %v3927_v42 }
  0xdc   : > { %958 = vmatpush1.bf16.msra.mxu0 %v3924_v40 }
  0xdd   : > { %959 = vmatprep.subr.bf16.mxu0 %v3925_v41 }
  0xde   : > { %3601 = vmatpush3.bf16.msra.mxu1 %v3927_v42 }
  0xdf   : > { %3602 = vmatprep.subr.bf16.mxu1 %v3931_v46 }
  0xe0   : > { %960 = vmatpush1.bf16.msra.mxu0 %v3928_v44 }
  0xe1   : > { %961 = vmatprep.subr.bf16.mxu0 %v3929_v45 }
  0xe2   : > { %3603 = vmatpush3.bf16.msra.mxu1 %v3931_v46 }
  0xe3   : > { %3604 = vmatprep.subr.bf16.mxu1 %v3933_v48 }
  0xe4   : > { %962 = vmatpush1.bf16.msra.mxu0 %v3932_v47 }
  0xe6   : > { %3605 = vmatpush3.bf16.msra.mxu1 %v3933_v48 }
 0x155   : > { %v704_v10 = vpop.xlane.xlu0 %703 }
 0x156   : > { %v708_v11 = vpop.xlane.xlu1 %707  ;;  %v712_v12 = vmul.f32 0.0078125, %v704_v10 }
 0x157   : > { %v714_v13 = vmul.f32 0.0078125, %v708_v11 }
 0x158   : > { %v4848_v14 = vsub.f32 %v696_v4, %v712_v12  ;;  %v3323_v4 = vld [vmem:[#allocation9] ss:$0 sm:$0xff] }
 0x159   : > { %v4850_v15 = vsub.f32 %v698_v5, %v714_v13  ;;  %v706_v16 = vpop.xlane.xlu0 %705 }
 0x15a   : > { %v710_v17 = vpop.xlane.xlu1 %709  ;;  %v713_v18 = vmul.f32 0.0078125, %v706_v16  ;;  %v720_v19 = vmul.f32 %v4848_v14, %v4848_v14 }
 0x15b   : > { %v715_v20 = vmul.f32 0.0078125, %v710_v17  ;;  %v722_v23 = vmul.f32 %v4850_v15, %v4850_v15 }
 0x15c   : > { %v4854_v21 = vsub.f32 %v697_v6, %v713_v18  ;;  %724 = vadd.xlane.f32.xlu0 %v720_v19  ;;  %v804_v18 = vlaneseq }
 0x15d   : > { %v4856_v22 = vsub.f32 %v699_v7, %v715_v20  ;;  %v802_v20 = vld [vmem:[%s5321_s5] sm:$0x7] }
 0x15e   : > { %v721_v24 = vmul.f32 %v4854_v21, %v4854_v21 }
 0x15f   : > { %v723_v25 = vmul.f32 %v4856_v22, %v4856_v22 }
 0x160   : > { %728 = vadd.xlane.f32.xlu0 %v722_v23  ;;  %726 = vadd.xlane.f32.xlu1 %v721_v24 }
 0x164   : > { %730 = vadd.xlane.f32.xlu1 %v723_v25 }
 0x1e5   : > { %v725_v49 = vpop.xlane.xlu0 %724 }
 0x1e6   : > { %v732_v50 = vmul.f32 0.0078125, %v725_v49 }
 0x1e8   : > { %v736_v51 = vadd.f32 1e-05, %v732_v50 }
 0x1e9   : > { %v727_v52 = vpop.xlane.xlu1 %726  ;;  %v729_v53 = vpop.xlane.xlu0 %728 }
 0x1ea   : > { %4022 = vrsqrt.f32 %v736_v51  ;;  %v733_v54 = vmul.f32 0.0078125, %v727_v52  ;;  %v734_v55 = vmul.f32 0.0078125, %v729_v53 }
 0x1ec   : > { %v737_v56 = vadd.f32 1e-05, %v733_v54  ;;  %v738_v57 = vadd.f32 1e-05, %v734_v55 }
 0x1ed   : > { %v731_v58 = vpop.xlane.xlu1 %730 }
 0x1ee   : > { %4024 = vrsqrt.f32 %v737_v56  ;;  %v735_v59 = vmul.f32 0.0078125, %v731_v58 }
 0x1ef   : > { %4026 = vrsqrt.f32 %v738_v57 }
 0x1f0   : > { %v739_v60 = vadd.f32 1e-05, %v735_v59 }
 0x1f2   : > { %4028 = vrsqrt.f32 %v739_v60  ;;  %v4914_v60 = vld [vmem:[%s602_s26] ss:$0 sm:$0xff]  ;;  %s5395_s26 = sld [smem:[#allocation45_spill]] (!%p3449_p10) }
 0x1f7   : > { %v4023_v61 = vpop.eup %4022 }
 0x1f8   : > { %v744_v62 = vmul.f32 %v4023_v61, %v4848_v14 }
 0x1fa   : > { %v754_v3 = vmul.f32 %v3322_v63, %v744_v62 }
 0x1fb   : > { %v4025_v0 = vpop.eup %4024 }
 0x1fc   : > { %v4027_v1 = vpop.eup %4026  ;;  %v745_v2 = vmul.f32 %v4025_v0, %v4854_v21  ;;  %v764_v8 = vadd.f32 %v3323_v4, %v754_v3 }
 0x1fd   : > { %v746_v5 = vmul.f32 %v4027_v1, %v4850_v15  ;;  %v4870_v15 = vshrl.u32 %v804_v18, 7 }
 0x1fe   : > { %v755_v6 = vmul.f32 %v3322_v63, %v745_v2 }
 0x1ff   : > { %v4029_v7 = vpop.eup %4028  ;;  %v756_v11 = vmul.f32 %v3322_v63, %v746_v5  ;;  %v806_v19 = vsub.s32 0, %v4870_v15  ;;  %v814_v23 = vsub.s32 2, %v4870_v15  ;;  %v810_v35 = vsub.s32 1, %v4870_v15 }
 0x200   : > { %v765_v9 = vadd.f32 %v3323_v4, %v755_v6  ;;  %v747_v10 = vmul.f32 %v4029_v7, %v4856_v22 }
 0x201   : > { %v766_v14 = vadd.f32 %v3323_v4, %v756_v11  ;;  %v807_v22 = vrot.slane %v802_v20, %v806_v19  ;;  %v815_v29 = vrot.slane %v802_v20, %v814_v23  ;;  %v811_v45 = vrot.slane %v802_v20, %v810_v35 }
 0x202   : > { %v768_v12 = vpack.c.bf16 %v765_v9, %v764_v8  ;;  %v757_v13 = vmul.f32 %v3322_v63, %v747_v10 }
 0x204   : > { %980 = vmatmul.mubr.bf16.vlgmr.msra.gmra.mxu0 %v768_v12  ;;  %3606 = vmatprep.mubr.bf16.mxu1 %v768_v12  ;;  %v767_v16 = vadd.f32 %v3323_v4, %v757_v13 }
 0x205   : > { %989 = vmatprep.mubr.bf16.mxu0 %v4519_v43 }
 0x206   : > { %v769_v17 = vpack.c.bf16 %v767_v16, %v766_v14 }
 0x208   : > { %3607 = vmatmul.mubr.bf16.vlgmr.msra.gmra.mxu1 %v769_v17 }
 0x20c   : > { %990 = vmatmul.mubr.bf16.gmra.mxu0 %v769_v17 }
 0x2c4   : > { %v981_v21 = vpop.f32.mrf.mxu0 }
 0x2c5   : > { %v982_v27 = vadd.f32 %v981_v21, %v807_v22 }
 0x2c6   : > { %v983_v24 = vpop.f32.mrf.mxu0 }
 0x2c7   : > { %v984_v51 = vadd.f32 %v983_v24, %v811_v45 }
 0x2c8   : > { %v985_v25 = vpop.f32.mrf.mxu0  ;;  %v3608_v26 = vpop.f32.mrf.mxu1 }
 0x2c9   : > { %v986_v28 = vadd.f32 %v985_v25, %v807_v22  ;;  %v1043_v36 = vadd.f32 %v3608_v26, %v815_v29 }
 0x2ca   : > { %v987_v30 = vpop.f32.mrf.mxu0  ;;  %v1034_v31 = vpop.f32.mrf.mxu1 }
 0x2cb   : > { %v4881_v32 = vpack.c.bf16 %v986_v28, %v982_v27  ;;  %v1035_v40 = vadd.f32 %v1034_v31, %v815_v29  ;;  %v988_v48 = vadd.f32 %v987_v30, %v811_v45 }
 0x2cc   : > { %v991_v33 = vpop.f32.mrf.mxu0  ;;  %v3609_v34 = vpop.f32.mrf.mxu1 }
 0x2cd   : > { %v1046_v37 = vadd.f32 %v3609_v34, %v815_v29  ;;  %3614 = vmatprep.mubr.msk.bf16.mxu0 %vm1077_vm0, %v4881_v32  ;;  %v4898_v53 = vpack.c.bf16 %v988_v48, %v984_v51  ;;  %v992_v57 = vadd.f32 %v991_v33, %v807_v22 }
 0x2ce   : > { %v993_v38 = vpop.f32.mrf.mxu0  ;;  %v1037_v39 = vpop.f32.mrf.mxu1 }
 0x2cf   : > { %v4886_v41 = vpack.c.bf16 %v1046_v37, %v1043_v36  ;;  %v1038_v42 = vadd.f32 %v1037_v39, %v815_v29  ;;  %v994_v49 = vadd.f32 %v993_v38, %v811_v45  ;;  %v1085_v55 = vsel %vm1077_vm0, %v4898_v53, 0 }
 0x2d0   : > { %v995_v44 = vpop.f32.mrf.mxu0 }
 0x2d1   : > { %v4890_v46 = vpack.c.bf16 %v1038_v42, %v1035_v40  ;;  %3618 = vmatprep.subr.bf16.mxu1 %v4886_v41  ;;  %v996_v56 = vadd.f32 %v995_v44, %v807_v22 }
 0x2d2   : > { %v997_v47 = vpop.f32.mrf.mxu0  ;;  %3619 = vmatpush3.bf16.msra.mxu1 %v4886_v41 }
 0x2d3   : > { %v998_v50 = vadd.f32 %v997_v47, %v811_v45  ;;  %3620 = vmatprep.subr.bf16.mxu1 %v4890_v46  ;;  %v4908_v58 = vpack.c.bf16 %v996_v56, %v992_v57 }
 0x2d5   : > { %v4895_v52 = vpack.c.bf16 %v998_v50, %v994_v49 }
 0x2d6   : > { %3621 = vmatpush3.bf16.msra.mxu1 %v4890_v46 }
 0x2d7   : > { %3726 = vmatprep.subr.msk.bf16.mxu0 %vm1077_vm0, %v4895_v52  ;;  %v1088_v54 = vsel %vm1077_vm0, %v4895_v52, 0 }
 0x2d8   : > { %3611 = vmatpush3.bf16.xpose.msra.mxu0 %v1088_v54 }
 0x2d9   : > { %3727 = vmatprep.subr.msk.bf16.mxu0 %vm1077_vm0, %v4898_v53 }
 0x2e0   : > { %3613 = vmatpush3.bf16.xpose.msra.mxu0 %v1085_v55 }
 0x2e7   : > { %3615 = vmatmul.mubr.msk.bf16.vlgmr.msra.gmra.mxu0 %vm1077_vm0, %v4908_v58 }
 0x3a7   : > { %v3616_v59 = vpop.f32.mrf.mxu0 }
 0x3a8   : > { %v1133_v0 = vadd.f32 %v3616_v59, %v4914_v60  ;;  %v3934_v59 = vld [vmem:[#allocation12 + $0x8] sm:$0xff]  }
 0x3a9   : > { %v1124_v61 = vpop.f32.mrf.mxu0 }
 0x3aa   : > { %v1125_v62 = vadd.f32 %v4914_v60, %v1124_v61  ;;  %v1145_v6 = vsel %vm1077_vm0, %v1133_v0, -inf  ;;  %v3935_v61 = vld [vmem:[#allocation12] sm:$0xff]  }
 0x3ab   : > { %v3617_v63 = vpop.f32.mrf.mxu0 }
 0x3ac   : > { %v1139_v1 = vsel %vm1077_vm0, %v1125_v62, -inf  ;;  %v1136_v4 = vadd.f32 %v3617_v63, %v4914_v60 }
 0x3ad   : > { %v1127_v2 = vpop.f32.mrf.mxu0  ;;  %1140 = vmax.xlane.f32.xlu0 %v1139_v1 }
 0x3ae   : > { %v1128_v3 = vadd.f32 %v4914_v60, %v1127_v2  ;;  %v1148_v7 = vsel %vm1077_vm0, %v1136_v4, -inf }
 0x3b0   : > { %v1142_v5 = vsel %vm1077_vm0, %v1128_v3, -inf }
 0x3b1   : > { %1143 = vmax.xlane.f32.xlu1 %v1142_v5  ;;  %1146 = vmax.xlane.f32.xlu0 %v1145_v6 }
 0x3b5   : > { %1149 = vmax.xlane.f32.xlu1 %v1148_v7 }
 0x436   : > { %v1141_v8 = vpop.xlane.xlu0 %1140 }
 0x437   : > { %v1151_v9 = vsub.f32 %v1125_v62, %v1141_v8 }
 0x439   : > { %v1155_v17 = vmul.f32 1.442695, %v1151_v9 }
 0x43a   : > { %v1144_v10 = vpop.xlane.xlu1 %1143  ;;  %v1147_v11 = vpop.xlane.xlu0 %1146 }
 0x43b   : > { %v1152_v12 = vsub.f32 %v1128_v3, %v1144_v10  ;;  %v1153_v13 = vsub.f32 %v1133_v0, %v1147_v11 }
 0x43d   : > { %v1157_v14 = vmul.f32 1.442695, %v1152_v12  ;;  %v1159_v16 = vmul.f32 1.442695, %v1153_v13 }
 0x43e   : > { %v1150_v18 = vpop.xlane.xlu1 %1149 }
 0x43f   : > { %4030 = vpow2.f32 %v1157_v14  ;;  %v1154_v20 = vsub.f32 %v1136_v4, %v1150_v18 }
 0x440   : > { %4032 = vpow2.f32 %v1159_v16 }
 0x441   : > { %v1161_v21 = vmul.f32 1.442695, %v1154_v20  ;;  %4034 = vpow2.f32 %v1155_v17 }
 0x443   : > { %4036 = vpow2.f32 %v1161_v21 }
 0x44c   : > { %v4031_v22 = vpop.eup %4030 }
 0x44d   : > { %v4033_v24 = vpop.eup %4032  ;;  %v1166_v25 = vsel %vm1077_vm0, %v4031_v22, 0.0 }
 0x44e   : > { %1167 = vadd.xlane.f32.xlu1 %v1166_v25  ;;  %v1169_v26 = vsel %vm1077_vm0, %v4033_v24, 0.0  ;;  %v4035_v27 = vpop.eup %4034 }
 0x44f   : > { %1170 = vadd.xlane.f32.xlu0 %v1169_v26  ;;  %v1163_v30 = vsel %vm1077_vm0, %v4035_v27, 0.0 }
 0x450   : > { %v4037_v28 = vpop.eup %4036 }
 0x451   : > { %v1172_v29 = vsel %vm1077_vm0, %v4037_v28, 0.0 }
 0x452   : > { %1173 = vadd.xlane.f32.xlu1 %v1172_v29 }
 0x453   : > { %1164 = vadd.xlane.f32.xlu0 %v1163_v30 }
 0x463   : > { %1250 = vrot.lane.b32.xlu1 %v4898_v53, %s4520_s2 }
 0x467   : > { %1244 = vrot.lane.b32.xlu1 %v4881_v32, %s4520_s2 }
 0x469   : > { %1252 = vrot.lane.b32.xlu0 %v4895_v52, %s4520_s2 }
 0x46b   : > { %1246 = vrot.lane.b32.xlu1 %v4908_v58, %s4520_s2 }
 0x4d7   : > { %v1168_v31 = vpop.xlane.xlu1 %1167 }
 0x4d8   : > { %v1171_v33 = vpop.xlane.xlu0 %1170 }
 0x4d9   : > { %4038 = vrcp.f32 %v1171_v33 }
 0x4da   : > { %4040 = vrcp.f32 %v1168_v31 }
 0x4db   : > { %v1174_v34 = vpop.xlane.xlu1 %1173 }
 0x4dc   : > { %4042 = vrcp.f32 %v1174_v34  ;;  %v1165_v36 = vpop.xlane.xlu0 %1164 }
 0x4dd   : > { %4044 = vrcp.f32 %v1165_v36 }
 0x4df   : > { %v1251_v44 = vpop.permute.xlu1 %1250 }
 0x4e0   : > { %v1253_v37 = vpop.permute.xlu0 %1252  ;;  %v1261_v56 = vsel %vm1077_vm0, %v1251_v44, 0 }
 0x4e1   : > { %3728 = vmatprep.subr.msk.bf16.mxu1 %vm1077_vm0, %v1253_v37  ;;  %v1264_v54 = vsel %vm1077_vm0, %v1253_v37, 0 }
 0x4e3   : > { %v1245_v55 = vpop.permute.xlu1 %1244 }
 0x4e6   : > { %v4039_v38 = vpop.eup %4038 }
 0x4e7   : > { %v4041_v39 = vpop.eup %4040  ;;  %v1181_v45 = vmul.f32 %v4039_v38, %v4033_v24  ;;  %v1247_v57 = vpop.permute.xlu1 %1246 }
 0x4e8   : > { %v1180_v49 = vmul.f32 %v4041_v39, %v4031_v22 }
 0x4e9   : > { %v4043_v40 = vpop.eup %4042 }
 0x4ea   : > { %v4045_v42 = vpop.eup %4044  ;;  %v1182_v47 = vmul.f32 %v4043_v40, %v4037_v28 }
 0x4eb   : > { %v1179_v48 = vmul.f32 %v4045_v42, %v4035_v27 }
 0x4ec   : > { %v1184_v50 = vpack.c.bf16 %v1182_v47, %v1181_v45 }
 0x4ed   : > { %v1183_v51 = vpack.c.bf16 %v1180_v49, %v1179_v48  ;;  %v3936_v49 = vld [vmem:[#allocation12 + $0x18] sm:$0xff]  }
 0x4ef   : > { %3622 = vmatprep.mubr.msk.bf16.mxu1 %vm1077_vm0, %v1183_v51 }
 0x4f0   : > { %3623 = vmatmul.mubr.msk.bf16.vlgmr.msra.gmra.mxu1 %vm1077_vm0, %v1184_v50 }
 0x4f1   : > { %3627 = vmatpush3.bf16.xpose.msra.mxu1 %v1264_v54  ;;  %3630 = vmatprep.mubr.msk.bf16.mxu1 %vm1077_vm0, %v1245_v55 }
 0x4f2   : > { %3729 = vmatprep.subr.msk.bf16.mxu1 %vm1077_vm0, %v1251_v44 }
 0x4f9   : > { %3629 = vmatpush3.bf16.xpose.msra.mxu1 %v1261_v56 }
 0x4fa   : > { %3650 = vmatprep.subr.bf16.mxu1 %v3934_v59 }
 0x500   : > { %3631 = vmatmul.mubr.msk.bf16.vlgmr.msra.gmra.mxu1 %vm1077_vm0, %v1247_v57 }
 0x501   : > { %3651 = vmatpush3.bf16.msra.mxu1 %v3934_v59 }
 0x502   : > { %3652 = vmatprep.subr.bf16.mxu1 %v3935_v61 }
 0x505   : > { %3653 = vmatpush3.bf16.msra.mxu1 %v3935_v61  ;;  %v3937_v61 = vld [vmem:[#allocation12 + $0x10] sm:$0xff]  }
 0x5b0   : > { %v3624_v62 = vpop.f32.mrf.mxu1 }
 0x5b2   : > { %v1225_v63 = vpop.f32.mrf.mxu1 }
 0x5b4   : > { %v3625_v0 = vpop.f32.mrf.mxu1 }
 0x5b5   : > { %v1241_v3 = vpack.c.bf16 %v3625_v0, %v3624_v62 }
 0x5b6   : > { %v1228_v1 = vpop.f32.mrf.mxu1 }
 0x5b7   : > { %v1240_v2 = vpack.c.bf16 %v1228_v1, %v1225_v63 }
 0x5b9   : > { %3654 = vmatprep.mubr.msk.bf16.mxu1 %vm1077_vm0, %v1240_v2 }
 0x5ba   : > { %3655 = vmatmul.mubr.msk.bf16.vlgmr.msra.gmra.mxu1 %vm1077_vm0, %v1241_v3 }
 0x5c0   : > { %v3632_v4 = vpop.f32.mrf.mxu1 }
 0x5c1   : > { %v1309_v8 = vadd.f32 %v3632_v4, %v4914_v60 }
 0x5c2   : > { %v1300_v5 = vpop.f32.mrf.mxu1 }
 0x5c3   : > { %v1301_v6 = vadd.f32 %v4914_v60, %v1300_v5  ;;  %v1321_v14 = vsel %vm1077_vm0, %v1309_v8, -inf }
 0x5c4   : > { %v3633_v7 = vpop.f32.mrf.mxu1 }
 0x5c5   : > { %v1315_v9 = vsel %vm1077_vm0, %v1301_v6, -inf  ;;  %v1312_v12 = vadd.f32 %v3633_v7, %v4914_v60 }
 0x5c6   : > { %v1303_v10 = vpop.f32.mrf.mxu1  ;;  %1316 = vmax.xlane.f32.xlu0 %v1315_v9 }
 0x5c7   : > { %v1304_v11 = vadd.f32 %v4914_v60, %v1303_v10  ;;  %v1324_v16 = vsel %vm1077_vm0, %v1312_v12, -inf }
 0x5c9   : > { %v1318_v13 = vsel %vm1077_vm0, %v1304_v11, -inf }
 0x5ca   : > { %1319 = vmax.xlane.f32.xlu1 %v1318_v13  ;;  %1322 = vmax.xlane.f32.xlu0 %v1321_v14 }
 0x5ce   : > { %1325 = vmax.xlane.f32.xlu0 %v1324_v16 }
 0x64f   : > { %v1317_v17 = vpop.xlane.xlu0 %1316 }
 0x650   : > { %v1327_v18 = vsub.f32 %v1301_v6, %v1317_v17 }
 0x652   : > { %v1331_v26 = vmul.f32 1.442695, %v1327_v18 }
 0x653   : > { %v1320_v20 = vpop.xlane.xlu1 %1319  ;;  %v1323_v21 = vpop.xlane.xlu0 %1322 }
 0x654   : > { %v1329_v22 = vsub.f32 %v1309_v8, %v1323_v21  ;;  %v1328_v24 = vsub.f32 %v1304_v11, %v1320_v20 }
 0x656   : > { %v1335_v25 = vmul.f32 1.442695, %v1329_v22  ;;  %v1333_v29 = vmul.f32 1.442695, %v1328_v24 }
 0x657   : > { %v1326_v27 = vpop.xlane.xlu0 %1325 }
 0x658   : > { %v1330_v28 = vsub.f32 %v1312_v12, %v1326_v27  ;;  %4046 = vpow2.f32 %v1335_v25 }
 0x659   : > { %4048 = vpow2.f32 %v1331_v26 }
 0x65a   : > { %v1337_v30 = vmul.f32 1.442695, %v1330_v28 }
 0x65c   : > { %4050 = vpow2.f32 %v1337_v30 }
 0x65d   : > { %4052 = vpow2.f32 %v1333_v29 }
 0x665   : > { %v4047_v31 = vpop.eup %4046 }
 0x666   : > { %v1345_v33 = vsel %vm1077_vm0, %v4047_v31, 0.0  ;;  %v4049_v34 = vpop.eup %4048 }
 0x667   : > { %1346 = vadd.xlane.f32.xlu0 %v1345_v33  ;;  %v1339_v39 = vsel %vm1077_vm0, %v4049_v34, 0.0 }
 0x669   : > { %v4051_v36 = vpop.eup %4050 }
 0x66a   : > { %v1348_v37 = vsel %vm1077_vm0, %v4051_v36, 0.0  ;;  %v4053_v38 = vpop.eup %4052 }
 0x66b   : > { %1349 = vadd.xlane.f32.xlu1 %v1348_v37  ;;  %1340 = vadd.xlane.f32.xlu0 %v1339_v39  ;;  %v1342_v40 = vsel %vm1077_vm0, %v4053_v38, 0.0 }
 0x66f   : > { %1343 = vadd.xlane.f32.xlu1 %v1342_v40 }
 0x680   : > { %1363 = vrot.lane.b32.xlu1 %v4890_v46, %s4520_s2 }
 0x681   : > { %1365 = vrot.lane.b32.xlu0 %v4886_v41, %s4520_s2 }
 0x684   : > { %1566 = vrot.lane.b32.xlu1 %v4895_v52, %s4521_s25 }
 0x685   : > { %1560 = vrot.lane.b32.xlu0 %v4881_v32, %s4521_s25 }
 0x688   : > { %1564 = vrot.lane.b32.xlu1 %v4898_v53, %s4521_s25 }
 0x689   : > { %1815 = vrot.lane.b32.xlu0 %v4895_v52, %s4522_s11 }
 0x68c   : > { %1562 = vrot.lane.b32.xlu1 %v4908_v58, %s4521_s25 }
 0x68d   : > { %1809 = vrot.lane.b32.xlu0 %v4881_v32, %s4522_s11 }
 0x690   : > { %1813 = vrot.lane.b32.xlu1 %v4898_v53, %s4522_s11 }
 0x694   : > { %1811 = vrot.lane.b32.xlu1 %v4908_v58, %s4522_s11 }
 0x6f0   : > { %v1347_v42 = vpop.xlane.xlu0 %1346 }
 0x6f4   : > { %v1350_v44 = vpop.xlane.xlu1 %1349  ;;  %v1341_v45 = vpop.xlane.xlu0 %1340 }
 0x6f5   : > { %4054 = vrcp.f32 %v1350_v44 }
 0x6f6   : > { %4056 = vrcp.f32 %v1341_v45 }
 0x6f7   : > { %4058 = vrcp.f32 %v1347_v42 }
 0x6f8   : > { %v1344_v47 = vpop.xlane.xlu1 %1343  ;;  %v1366_v52 = vpop.permute.xlu0 %1365 }
 0x6f9   : > { %4060 = vrcp.f32 %v1344_v47  ;;  %3634 = vmatprep.subr.bf16.mxu0 %v1366_v52 }
 0x6fa   : > { %3635 = vmatpush3.bf16.msra.mxu0 %v1366_v52 }
 0x6fc   : > { %v1364_v48 = vpop.permute.xlu1 %1363  ;;  %v1561_v5 = vpop.permute.xlu0 %1560 }
 0x6fd   : > { %3636 = vmatprep.subr.bf16.mxu0 %v1364_v48 }
 0x6fe   : > { %3637 = vmatpush3.bf16.msra.mxu0 %v1364_v48 }
 0x6ff   : > { %3642 = vmatprep.subr.bf16.mxu0 %v3936_v49 }
 0x700   : > { %v1567_v62 = vpop.permute.xlu1 %1566  ;;  %v1816_v9 = vpop.permute.xlu0 %1815 }
 0x701   : > { %v1578_v6 = vsel %vm1077_vm0, %v1567_v62, 0  ;;  %v1827_v11 = vsel %vm1077_vm0, %v1816_v9, 0 }
 0x702   : > { %v4055_v32 = vpop.eup %4054 }
 0x703   : > { %v4057_v53 = vpop.eup %4056  ;;  %v1358_v51 = vmul.f32 %v4055_v32, %v4051_v36 }
 0x704   : > { %v4059_v50 = vpop.eup %4058  ;;  %v1355_v54 = vmul.f32 %v4057_v53, %v4049_v34  ;;  %v1565_v7 = vpop.permute.xlu1 %1564 }
 0x705   : > { %v1357_v56 = vmul.f32 %v4059_v50, %v4047_v31  ;;  %v1575_v8 = vsel %vm1077_vm0, %v1565_v7, 0  ;;  %v1810_v12 = vpop.permute.xlu0 %1809 }
 0x706   : > { %v4061_v58 = vpop.eup %4060 }
 0x707   : > { %v1356_v55 = vmul.f32 %v4061_v58, %v4053_v38  ;;  %v1360_v59 = vpack.c.bf16 %v1358_v51, %v1357_v56 }
 0x708   : > { %v1563_v10 = vpop.permute.xlu1 %1562 }
 0x709   : > { %v1359_v57 = vpack.c.bf16 %v1356_v55, %v1355_v54 }
 0x70b   : > { %3638 = vmatprep.mubr.msk.bf16.mxu0 %vm1077_vm0, %v1359_v57 }
 0x70c   : > { %3639 = vmatmul.mubr.msk.bf16.vlgmr.msra.gmra.mxu0 %vm1077_vm0, %v1360_v59  ;;  %v1814_v13 = vpop.permute.xlu1 %1813 }
 0x70d   : > { %3643 = vmatpush3.bf16.msra.mxu0 %v3936_v49  ;;  %v1824_v14 = vsel %vm1077_vm0, %v1814_v13, 0 }
 0x70e   : > { %3644 = vmatprep.subr.bf16.mxu0 %v3937_v61 }
 0x710   : > { %v1812_v16 = vpop.permute.xlu1 %1811 }
 0x711   : > { %3645 = vmatpush3.bf16.msra.mxu0 %v3937_v61 }
 0x712   : > { %3730 = vmatprep.subr.msk.bf16.mxu0 %vm1077_vm0, %v1567_v62 }
 0x7cc   : > { %v3640_v63 = vpop.f32.mrf.mxu0 }
 0x7ce   : > { %v1409_v0 = vpop.f32.mrf.mxu0 }
 0x7d0   : > { %v3641_v1 = vpop.f32.mrf.mxu0 }
 0x7d1   : > { %v1425_v4 = vpack.c.bf16 %v3641_v1, %v3640_v63 }
 0x7d2   : > { %v1412_v2 = vpop.f32.mrf.mxu0 }
 0x7d3   : > { %v1424_v3 = vpack.c.bf16 %v1412_v2, %v1409_v0 }
 0x7d5   : > { %3646 = vmatprep.mubr.msk.bf16.mxu0 %vm1077_vm0, %v1424_v3 }
 0x7d6   : > { %3647 = vmatmul.mubr.msk.bf16.vlgmr.msra.gmra.mxu0 %vm1077_vm0, %v1425_v4 }
 0x7d7   : > { %3659 = vmatpush3.bf16.xpose.msra.mxu0 %v1578_v6  ;;  %3662 = vmatprep.mubr.msk.bf16.mxu0 %vm1077_vm0, %v1561_v5 }
 0x7d8   : > { %3731 = vmatprep.subr.msk.bf16.mxu0 %vm1077_vm0, %v1565_v7 }
 0x7df   : > { %3661 = vmatpush3.bf16.xpose.msra.mxu0 %v1575_v8 }
 0x7e0   : > { %3732 = vmatprep.subr.msk.bf16.mxu0 %vm1077_vm0, %v1816_v9 }
 0x7e6   : > { %3663 = vmatmul.mubr.msk.bf16.vlgmr.msra.gmra.mxu0 %vm1077_vm0, %v1563_v10 }
 0x7e7   : > { %3683 = vmatpush3.bf16.xpose.msra.mxu0 %v1827_v11  ;;  %3686 = vmatprep.mubr.msk.bf16.mxu0 %vm1077_vm0, %v1810_v12 }
 0x7e8   : > { %3733 = vmatprep.subr.msk.bf16.mxu0 %vm1077_vm0, %v1814_v13 }
 0x7ef   : > { %3685 = vmatpush3.bf16.xpose.msra.mxu0 %v1824_v14 }
 0x7f6   : > { %3687 = vmatmul.mubr.msk.bf16.vlgmr.msra.gmra.mxu0 %vm1077_vm0, %v1812_v16 }
 0x7f7   : > { %2387 = vmatprep.mubr.bf16.mxu0 %v4519_v43 }
 0x896   : > { %v4995_v17 = vpop.f32.mrf.mxu0 }
 0x898   : > { %v4997_v18 = vpop.f32.mrf.mxu0 }
 0x89a   : > { %v4999_v20 = vpop.f32.mrf.mxu0 }
 0x89c   : > { %v5001_v21 = vpop.f32.mrf.mxu0 }
 0x8a6   : > { %v3664_v22 = vpop.f32.mrf.mxu0 }
 0x8a7   : > { %v1623_v27 = vadd.f32 %v3664_v22, %v4914_v60 }
 0x8a8   : > { %v1614_v24 = vpop.f32.mrf.mxu0 }
 0x8a9   : > { %v1615_v25 = vadd.f32 %v4914_v60, %v1614_v24  ;;  %v1635_v34 = vsel %vm1077_vm0, %v1623_v27, -inf }
 0x8aa   : > { %v3665_v26 = vpop.f32.mrf.mxu0 }
 0x8ab   : > { %v1629_v28 = vsel %vm1077_vm0, %v1615_v25, -inf  ;;  %v1626_v31 = vadd.f32 %v3665_v26, %v4914_v60 }
 0x8ac   : > { %v1617_v29 = vpop.f32.mrf.mxu0  ;;  %1630 = vmax.xlane.f32.xlu0 %v1629_v28 }
 0x8ad   : > { %v1618_v30 = vadd.f32 %v4914_v60, %v1617_v29  ;;  %v1638_v36 = vsel %vm1077_vm0, %v1626_v31, -inf }
 0x8af   : > { %v1632_v33 = vsel %vm1077_vm0, %v1618_v30, -inf }
 0x8b0   : > { %1633 = vmax.xlane.f32.xlu1 %v1632_v33  ;;  %1636 = vmax.xlane.f32.xlu0 %v1635_v34 }
 0x8b4   : > { %1639 = vmax.xlane.f32.xlu0 %v1638_v36 }
 0x8b6   : > { %v3688_v59 = vpop.f32.mrf.mxu0 }
 0x8b7   : > { %v1872_v2 = vadd.f32 %v3688_v59, %v4914_v60 }
 0x8b8   : > { %v1863_v61 = vpop.f32.mrf.mxu0 }
 0x8b9   : > { %v1864_v1 = vadd.f32 %v4914_v60, %v1863_v61  ;;  %v1884_v6 = vsel %vm1077_vm0, %v1872_v2, -inf }
 0x8ba   : > { %v3689_v62 = vpop.f32.mrf.mxu0 }
 0x8bb   : > { %v1875_v4 = vadd.f32 %v3689_v62, %v4914_v60  ;;  %v1878_v5 = vsel %vm1077_vm0, %v1864_v1, -inf }
 0x8bc   : > { %v1866_v63 = vpop.f32.mrf.mxu0 }
 0x8bd   : > { %v1867_v0 = vadd.f32 %v4914_v60, %v1866_v63  ;;  %v1887_v7 = vsel %vm1077_vm0, %v1875_v4, -inf }
 0x8bf   : > { %v1881_v3 = vsel %vm1077_vm0, %v1867_v0, -inf }
 0x935   : > { %v1631_v37 = vpop.xlane.xlu0 %1630 }
 0x936   : > { %v1641_v38 = vsub.f32 %v1615_v25, %v1631_v37 }
 0x938   : > { %v1645_v47 = vmul.f32 1.442695, %v1641_v38 }
 0x939   : > { %v1634_v39 = vpop.xlane.xlu1 %1633  ;;  %v1637_v40 = vpop.xlane.xlu0 %1636 }
 0x93a   : > { %v1643_v42 = vsub.f32 %v1623_v27, %v1637_v40  ;;  %v1642_v44 = vsub.f32 %v1618_v30, %v1634_v39 }
 0x93c   : > { %v1649_v45 = vmul.f32 1.442695, %v1643_v42  ;;  %v1647_v49 = vmul.f32 1.442695, %v1642_v44 }
 0x93d   : > { %v1640_v52 = vpop.xlane.xlu0 %1639 }
 0x93e   : > { %v1644_v48 = vsub.f32 %v1626_v31, %v1640_v52  ;;  %4062 = vpow2.f32 %v1649_v45 }
 0x93f   : > { %4064 = vpow2.f32 %v1645_v47 }
 0x940   : > { %v1651_v32 = vmul.f32 1.442695, %v1644_v48 }
 0x942   : > { %4066 = vpow2.f32 %v1651_v32 }
 0x943   : > { %4068 = vpow2.f32 %v1647_v49 }
 0x94b   : > { %v4063_v53 = vpop.eup %4062 }
 0x94c   : > { %v1659_v50 = vsel %vm1077_vm0, %v4063_v53, 0.0  ;;  %v4065_v58 = vpop.eup %4064 }
 0x94d   : > { %1660 = vadd.xlane.f32.xlu0 %v1659_v50  ;;  %v1653_v56 = vsel %vm1077_vm0, %v4065_v58, 0.0 }
 0x94f   : > { %v4067_v51 = vpop.eup %4066 }
 0x950   : > { %v1662_v54 = vsel %vm1077_vm0, %v4067_v51, 0.0  ;;  %v4069_v55 = vpop.eup %4068 }
 0x951   : > { %1663 = vadd.xlane.f32.xlu1 %v1662_v54  ;;  %1654 = vadd.xlane.f32.xlu0 %v1653_v56  ;;  %v1656_v57 = vsel %vm1077_vm0, %v4069_v55, 0.0  ;;  %v3939_v54 = vld [vmem:[#allocation12 + $0x20] sm:$0xff]  }
 0x955   : > { %1657 = vadd.xlane.f32.xlu1 %v1656_v57 }
 0x966   : > { %1675 = vrot.lane.b32.xlu1 %v4890_v46, %s4521_s25 }
 0x967   : > { %1677 = vrot.lane.b32.xlu0 %v4886_v41, %s4521_s25 }
 0x986   : > { %1882 = vmax.xlane.f32.xlu0 %v1881_v3 }
 0x98a   : > { %1879 = vmax.xlane.f32.xlu1 %v1878_v5  ;;  %1885 = vmax.xlane.f32.xlu0 %v1884_v6 }
 0x98e   : > { %1888 = vmax.xlane.f32.xlu1 %v1887_v7 }
 0x9d6   : > { %v1661_v8 = vpop.xlane.xlu0 %1660 }
 0x9da   : > { %v1664_v9 = vpop.xlane.xlu1 %1663  ;;  %v1655_v10 = vpop.xlane.xlu0 %1654 }
 0x9db   : > { %4070 = vrcp.f32 %v1664_v9 }
 0x9dc   : > { %4072 = vrcp.f32 %v1655_v10 }
 0x9dd   : > { %4074 = vrcp.f32 %v1661_v8 }
 0x9de   : > { %v1658_v11 = vpop.xlane.xlu1 %1657  ;;  %v1678_v12 = vpop.permute.xlu0 %1677 }
 0x9df   : > { %4076 = vrcp.f32 %v1658_v11  ;;  %3666 = vmatprep.subr.bf16.mxu1 %v1678_v12 }
 0x9e0   : > { %3667 = vmatpush3.bf16.msra.mxu1 %v1678_v12 }
 0x9e2   : > { %v1676_v60 = vpop.permute.xlu1 %1675 }
 0x9e3   : > { %3668 = vmatprep.subr.bf16.mxu1 %v1676_v60 }
 0x9e4   : > { %3669 = vmatpush3.bf16.msra.mxu1 %v1676_v60 }
 0x9e8   : > { %v4071_v13 = vpop.eup %4070 }
 0x9e9   : > { %v4073_v14 = vpop.eup %4072  ;;  %v1672_v24 = vmul.f32 %v4071_v13, %v4067_v51  ;;  %v3938_v51 = vld [vmem:[#allocation12 + $0x28] sm:$0xff]  }
 0x9ea   : > { %v4075_v16 = vpop.eup %4074  ;;  %v1669_v25 = vmul.f32 %v4073_v14, %v4065_v58  ;;  %3674 = vmatprep.subr.bf16.mxu1 %v3938_v51 }
 0x9eb   : > { %v1671_v27 = vmul.f32 %v4075_v16, %v4063_v53 }
 0x9ec   : > { %v4077_v22 = vpop.eup %4076 }
 0x9ed   : > { %v1670_v26 = vmul.f32 %v4077_v22, %v4069_v55  ;;  %v1674_v29 = vpack.c.bf16 %v1672_v24, %v1671_v27  ;;  %v3656_v55 = vpop.f32.mrf.mxu1  ;;  %v3940_v22 = vld [vmem:[#allocation12 + $0x38] sm:$0xff]   ;;  %v3941_v24 = vld [vmem:[#allocation12 + $0x30] sm:$0xff]  }
 0x9ef   : > { %v1673_v28 = vpack.c.bf16 %v1670_v26, %v1669_v25  ;;  %v1545_v56 = vpop.f32.mrf.mxu1  ;;  %v1554_v25 = vadd.f32 %v3656_v55, %v4995_v17 }
 0x9f0   : > { %v1546_v27 = vadd.f32 %v1545_v56, %v4997_v18  ;;  %v4136_v56 = vld [vmem:[#allocation2] sm:$0xff] }
 0x9f1   : > { %3670 = vmatprep.mubr.msk.bf16.mxu1 %vm1077_vm0, %v1673_v28  ;;  %v3657_v57 = vpop.f32.mrf.mxu1 }
 0x9f2   : > { %3671 = vmatmul.mubr.msk.bf16.vlgmr.msra.gmra.mxu1 %vm1077_vm0, %v1674_v29 }
 0x9f3   : > { %3675 = vmatpush3.bf16.msra.mxu1 %v3938_v51  ;;  %v1548_v59 = vpop.f32.mrf.mxu1 }
 0x9f4   : > { %3676 = vmatprep.subr.bf16.mxu1 %v3939_v54 }
 0x9f7   : > { %3677 = vmatpush3.bf16.msra.mxu1 %v3939_v54 }
 0xa0f   : > { %v1883_v30 = vpop.xlane.xlu0 %1882 }
 0xa10   : > { %v1891_v37 = vsub.f32 %v1867_v0, %v1883_v30  ;;  %v1557_v30 = vadd.f32 %v3657_v57, %v4999_v20 }
 0xa12   : > { %v1896_v44 = vmul.f32 1.442695, %v1891_v37 }
 0xa13   : > { %v1880_v31 = vpop.xlane.xlu1 %1879  ;;  %v1886_v34 = vpop.xlane.xlu0 %1885 }
 0xa14   : > { %v1890_v33 = vsub.f32 %v1864_v1, %v1880_v31  ;;  %v1892_v36 = vsub.f32 %v1872_v2, %v1886_v34  ;;  %v1549_v34 = vadd.f32 %v1548_v59, %v5001_v21  ;;  %v4134_v21 = vld [vmem:[#allocation2 + $0x10] sm:$0xff]  ;;  %v4137_v59 = vld [vmem:[#allocation2 + $0x18] sm:$0xff] }
 0xa16   : > { %v1894_v38 = vmul.f32 1.442695, %v1890_v33  ;;  %v1898_v39 = vmul.f32 1.442695, %v1892_v36 }
 0xa17   : > { %v1889_v40 = vpop.xlane.xlu1 %1888 }
 0xa18   : > { %v1893_v42 = vsub.f32 %v1875_v4, %v1889_v40  ;;  %4078 = vpow2.f32 %v1898_v39 }
 0xa19   : > { %4080 = vpow2.f32 %v1894_v38 }
 0xa1a   : > { %v1900_v45 = vmul.f32 1.442695, %v1893_v42 }
 0xa1c   : > { %4082 = vpow2.f32 %v1900_v45 }
 0xa1d   : > { %4084 = vpow2.f32 %v1896_v44 }
 0xa25   : > { %v4079_v47 = vpop.eup %4078 }
 0xa26   : > { %v1908_v52 = vsel %vm1077_vm0, %v4079_v47, 0.0  ;;  %v4081_v48 = vpop.eup %4080 }
 0xa27   : > { %1909 = vadd.xlane.f32.xlu0 %v1908_v52  ;;  %v1902_v50 = vsel %vm1077_vm0, %v4081_v48, 0.0 }
 0xa29   : > { %v4083_v49 = vpop.eup %4082 }
 0xa2a   : > { %v1911_v32 = vsel %vm1077_vm0, %v4083_v49, 0.0  ;;  %v4085_v53 = vpop.eup %4084 }
 0xa2b   : > { %1912 = vadd.xlane.f32.xlu1 %v1911_v32  ;;  %1903 = vadd.xlane.f32.xlu0 %v1902_v50  ;;  %v1905_v58 = vsel %vm1077_vm0, %v4085_v53, 0.0 }
 0xa2f   : > { %1906 = vadd.xlane.f32.xlu1 %v1905_v58  ;;  %v4135_v58 = vld [vmem:[#allocation2 + $0x8] sm:$0xff] }
 0xa40   : > { %1924 = vrot.lane.b32.xlu1 %v4890_v46, %s4522_s11 }
 0xa41   : > { %1926 = vrot.lane.b32.xlu0 %v4886_v41, %s4522_s11 }
 0xab0   : > { %v1910_v61 = vpop.xlane.xlu0 %1909 }
 0xab2   : > { %v3672_v62 = vpop.f32.mrf.mxu1 }
 0xab4   : > { %v1913_v63 = vpop.xlane.xlu1 %1912  ;;  %v1721_v0 = vpop.f32.mrf.mxu1 }
 0xab5   : > { %v1904_v1 = vpop.xlane.xlu0 %1903  ;;  %4086 = vrcp.f32 %v1913_v63 }
 0xab6   : > { %v3673_v2 = vpop.f32.mrf.mxu1  ;;  %4088 = vrcp.f32 %v1904_v1  ;;  %v3942_v1 = vld [vmem:[#allocation14 + $0xe0] ss:$16 sps:$4 sm:$0xff]  }
 0xab7   : > { %4090 = vrcp.f32 %v1910_v61  ;;  %v1737_v6 = vpack.c.bf16 %v3673_v2, %v3672_v62  ;;  %v3944_v2 = vld [vmem:[#allocation14 + $0xe4] ss:$16 sps:$4 sm:$0xff]  }
 0xab8   : > { %v1724_v3 = vpop.f32.mrf.mxu1  ;;  %v1907_v4 = vpop.xlane.xlu1 %1906  ;;  %2355 = vmatprep.subr.bf16.mxu0 %v3944_v2 }
 0xab9   : > { %v1736_v5 = vpack.c.bf16 %v1724_v3, %v1721_v0  ;;  %4092 = vrcp.f32 %v1907_v4  ;;  %v1927_v46 = vpop.permute.xlu0 %1926  ;;  %v3945_v3 = vld [vmem:[#allocation14 + $0xe8] ss:$16 sps:$4 sm:$0xff]   ;;  %v3947_v4 = vld [vmem:[#allocation14 + $0xec] ss:$16 sps:$4 sm:$0xff]   ;;  %2356 = vmatpush1.bf16.msra.mxu0 %v3942_v1 }
 0xaba   : > { %3690 = vmatprep.subr.bf16.mxu1 %v1927_v46 }
 0xabb   : > { %3678 = vmatprep.mubr.msk.bf16.mxu1 %vm1077_vm0, %v1736_v5 }
 0xabc   : > { %3679 = vmatmul.mubr.msk.bf16.vlgmr.msra.gmra.mxu1 %vm1077_vm0, %v1737_v6  ;;  %v1925_v41 = vpop.permute.xlu1 %1924 }
 0xabd   : > { %3691 = vmatpush3.bf16.msra.mxu1 %v1927_v46 }
 0xabe   : > { %3692 = vmatprep.subr.bf16.mxu1 %v1925_v41 }
 0xac1   : > { %3693 = vmatpush3.bf16.msra.mxu1 %v1925_v41 }
 0xac2   : > { %v4087_v7 = vpop.eup %4086  ;;  %3698 = vmatprep.subr.bf16.mxu1 %v3940_v22 }
 0xac3   : > { %v4089_v8 = vpop.eup %4088  ;;  %v1921_v11 = vmul.f32 %v4087_v7, %v4083_v49 }
 0xac4   : > { %v4091_v9 = vpop.eup %4090  ;;  %v1918_v12 = vmul.f32 %v4089_v8, %v4081_v48 }
 0xac5   : > { %v1920_v13 = vmul.f32 %v4091_v9, %v4079_v47 }
 0xac6   : > { %v4093_v10 = vpop.eup %4092 }
 0xac7   : > { %v1919_v60 = vmul.f32 %v4093_v10, %v4085_v53  ;;  %v1923_v16 = vpack.c.bf16 %v1921_v11, %v1920_v13  ;;  %v3381_v53 = vld [vmem:[%s5323_s7] ss:$0 sm:$0xff] }
 0xac9   : > { %v1922_v14 = vpack.c.bf16 %v1919_v60, %v1918_v12 }
 0xacb   : > { %3694 = vmatprep.mubr.msk.bf16.mxu1 %vm1077_vm0, %v1922_v14 }
 0xacc   : > { %3695 = vmatmul.mubr.msk.bf16.vlgmr.msra.gmra.mxu1 %vm1077_vm0, %v1923_v16 }
 0xacd   : > { %3699 = vmatpush3.bf16.msra.mxu1 %v3940_v22 }
 0xace   : > { %3700 = vmatprep.subr.bf16.mxu1 %v3941_v24 }
 0xad1   : > { %3701 = vmatpush3.bf16.msra.mxu1 %v3941_v24 }
 0xad2   : > { %2408 = vmatprep.subr.bf16.mxu1 %v3947_v4 }
 0xb7c   : > { %v3680_v26 = vpop.f32.mrf.mxu1 }
 0xb7d   : > { %v1807_v28 = vadd.f32 %v3680_v26, %v1554_v25  ;;  %v3950_v25 = vld [vmem:[#allocation14 + $0xc4] ss:$16 sps:$4 sm:$0xff]   ;;  %v3953_v26 = vld [vmem:[#allocation14 + $0xcc] ss:$16 sps:$4 sm:$0xff]  }
 0xb7e   : > { %v1790_v29 = vpop.f32.mrf.mxu1  ;;  %2357 = vmatprep.subr.bf16.mxu0 %v3950_v25 }
 0xb7f   : > { %v1805_v31 = vadd.f32 %v1790_v29, %v1546_v27  ;;  %v3948_v27 = vld [vmem:[#allocation14 + $0xc0] ss:$16 sps:$4 sm:$0xff]   ;;  %v3956_v29 = vld [vmem:[#allocation14 + $0xa4] ss:$16 sps:$4 sm:$0xff]  }
 0xb80   : > { %v3681_v33 = vpop.f32.mrf.mxu1  ;;  %2358 = vmatpush1.bf16.msra.mxu0 %v3948_v27 }
 0xb81   : > { %v1808_v36 = vadd.f32 %v3681_v33, %v1557_v30  ;;  %v3959_v30 = vld [vmem:[#allocation14 + $0xac] ss:$16 sps:$4 sm:$0xff]   ;;  %v3957_v33 = vld [vmem:[#allocation14 + $0xa8] ss:$16 sps:$4 sm:$0xff]   ;;  %2359 = vmatprep.subr.bf16.mxu0 %v3956_v29 }
 0xb82   : > { %v1793_v37 = vpop.f32.mrf.mxu1 }
 0xb83   : > { %v1806_v38 = vadd.f32 %v1793_v37, %v1549_v34  ;;  %v3962_v34 = vld [vmem:[#allocation14 + $0x84] ss:$16 sps:$4 sm:$0xff]   ;;  %v3960_v37 = vld [vmem:[#allocation14 + $0x80] ss:$16 sps:$4 sm:$0xff]  }
 0xb8c   : > { %v3696_v39 = vpop.f32.mrf.mxu1 }
 0xb8e   : > { %v1970_v40 = vpop.f32.mrf.mxu1 }
 0xb90   : > { %v3697_v42 = vpop.f32.mrf.mxu1 }
 0xb91   : > { %v1986_v17 = vpack.c.bf16 %v3697_v42, %v3696_v39  ;;  %v3966_v39 = vld [vmem:[#allocation14 + $0x60] ss:$16 sps:$4 sm:$0xff]   ;;  %v3969_v42 = vld [vmem:[#allocation14 + $0x68] ss:$16 sps:$4 sm:$0xff]  }
 0xb92   : > { %v1973_v44 = vpop.f32.mrf.mxu1 }
 0xb93   : > { %v1985_v45 = vpack.c.bf16 %v1973_v44, %v1970_v40  ;;  %v3968_v40 = vld [vmem:[#allocation14 + $0x64] ss:$16 sps:$4 sm:$0xff]   ;;  %v3971_v44 = vld [vmem:[#allocation14 + $0x6c] ss:$16 sps:$4 sm:$0xff]  }
 0xb95   : > { %3702 = vmatprep.mubr.msk.bf16.mxu1 %vm1077_vm0, %v1985_v45  ;;  %v3974_v45 = vld [vmem:[#allocation14 + $0x44] ss:$16 sps:$4 sm:$0xff]  }
 0xb96   : > { %3703 = vmatmul.mubr.msk.bf16.vlgmr.msra.gmra.mxu1 %vm1077_vm0, %v1986_v17  ;;  %v3977_v17 = vld [vmem:[#allocation14 + $0x4c] ss:$16 sps:$4 sm:$0xff]  }
 0xb97   : > { %2440 = vmatprep.mubr.bf16.mxu1 %v4519_v43  ;;  %2409 = vmatpush1.bf16.msra.mxu1 %v3945_v3 }
 0xb98   : > { %2410 = vmatprep.subr.bf16.mxu1 %v3953_v26 }
 0xc56   : > { %v3704_v18 = vpop.f32.mrf.mxu1 }
 0xc57   : > { %v2056_v50 = vadd.f32 %v3704_v18, %v1807_v28  ;;  %v3951_v28 = vld [vmem:[#allocation14 + $0xc8] ss:$16 sps:$4 sm:$0xff]   ;;  %v3972_v18 = vld [vmem:[#allocation14 + $0x40] ss:$16 sps:$4 sm:$0xff]  }
 0xc58   : > { %v2039_v20 = vpop.f32.mrf.mxu1  ;;  %2411 = vmatpush1.bf16.msra.mxu1 %v3951_v28 }
 0xc59   : > { %v2054_v47 = vadd.f32 %v2039_v20, %v1805_v31  ;;  %v2060_v61 = vadd.f32 %v4137_v59, %v2056_v50  ;;  %v3954_v31 = vld [vmem:[#allocation14 + $0xa0] ss:$16 sps:$4 sm:$0xff]   ;;  %2412 = vmatprep.subr.bf16.mxu1 %v3959_v30  ;;  %v3975_v20 = vld [vmem:[#allocation14 + $0x48] ss:$16 sps:$4 sm:$0xff]  }
 0xc5a   : > { %v3705_v52 = vpop.f32.mrf.mxu1  ;;  %2360 = vmatpush1.bf16.msra.mxu0 %v3954_v31  ;;  %v3987_v50 = vld [vmem:[#allocation14 + $0x8] ss:$16 sps:$4 sm:$0xff]  }
 0xc5b   : > { %v2058_v48 = vadd.f32 %v4134_v21, %v2054_v47  ;;  %v2057_v49 = vadd.f32 %v3705_v52, %v1808_v36  ;;  %v5060_v0 = vadd.f32 %v3381_v53, %v2060_v61  ;;  %v3965_v36 = vld [vmem:[#allocation14 + $0x8c] ss:$16 sps:$4 sm:$0xff]   ;;  %2361 = vmatprep.subr.bf16.mxu0 %v3962_v34  ;;  %v3980_v47 = vld [vmem:[#allocation14 + $0x24] ss:$16 sps:$4 sm:$0xff]   ;;  %v3978_v21 = vld [vmem:[#allocation14 + $0x20] ss:$16 sps:$4 sm:$0xff]  }
 0xc5c   : > { %v2042_v32 = vpop.f32.mrf.mxu1  ;;  %2413 = vmatpush1.bf16.msra.mxu1 %v3957_v33  ;;  %v3983_v52 = vld [vmem:[#allocation14 + $0x2c] ss:$16 sps:$4 sm:$0xff]  }
 0xc5d   : > { %v2061_v51 = vadd.f32 %v4135_v58, %v2057_v49  ;;  %v2055_v54 = vadd.f32 %v2042_v32, %v1806_v38  ;;  %v5051_v55 = vadd.f32 %v3381_v53, %v2058_v48  ;;  %v3963_v38 = vld [vmem:[#allocation14 + $0x88] ss:$16 sps:$4 sm:$0xff]   ;;  %2414 = vmatprep.subr.bf16.mxu1 %v3965_v36  ;;  %v3986_v49 = vld [vmem:[#allocation14 + $0x4] ss:$16 sps:$4 sm:$0xff]   ;;  %v3989_v32 = vld [vmem:[#allocation14 + $0xc] ss:$16 sps:$4 sm:$0xff]  }
 0xc5e   : > { %2362 = vmatpush1.bf16.msra.mxu0 %v3960_v37  ;;  %v3981_v48 = vld [vmem:[#allocation14 + $0x28] ss:$16 sps:$4 sm:$0xff]   ;;  %v3995_v37 = vld [vmem:[#allocation15 + $0xf0] sm:$0xff]  }
 0xc5f   : > { %v2059_v57 = vadd.f32 %v4136_v56, %v2055_v54  ;;  %2075 = vadd.xlane.f32.xlu1 %v5051_v55  ;;  %v5054_v62 = vadd.f32 %v3381_v53, %v2061_v51  ;;  %2363 = vmatprep.subr.bf16.mxu0 %v3968_v40  ;;  %v3990_v33 = vld [vmem:[#allocation15 + $0x78] sm:$0xff]   ;;  %v3999_v40 = vld [vmem:[#allocation15 + $0xe8] sm:$0xff]  }
 0xc60   : > { %2415 = vmatpush1.bf16.msra.mxu1 %v3963_v38  ;;  %v3991_v34 = vld [vmem:[#allocation15 + $0xf8] sm:$0xff]   ;;  %v3996_v38 = vld [vmem:[#allocation15 + $0x30] sm:$0xff]  }
 0xc61   : > { %v5056_v63 = vadd.f32 %v3381_v53, %v2059_v57  ;;  %2416 = vmatprep.subr.bf16.mxu1 %v3971_v44  ;;  %v3984_v53 = vld [vmem:[#allocation14] ss:$16 sps:$4 sm:$0xff]   ;;  %v3992_v36 = vld [vmem:[#allocation15 + $0x38] sm:$0xff]   ;;  %v4001_v44 = vld [vmem:[#allocation15 + $0xa8] sm:$0xff]  }
 0xc62   : > { %2364 = vmatpush1.bf16.msra.mxu0 %v3966_v39  ;;  %v3997_v39 = vld [vmem:[#allocation15 + $0xb0] sm:$0xff]  }
 0xc63   : > { %2081 = vadd.xlane.f32.xlu1 %v5054_v62  ;;  %2077 = vadd.xlane.f32.xlu0 %v5056_v63 }
 0xc64   : > { %2417 = vmatpush1.bf16.msra.mxu1 %v3969_v42  ;;  %2365 = vmatprep.subr.bf16.mxu0 %v3974_v45  ;;  %v4000_v42 = vld [vmem:[#allocation15 + $0x28] sm:$0xff]   ;;  %v4002_v45 = vld [vmem:[#allocation15 + $0x60] sm:$0xff]  }
 0xc65   : > { %2418 = vmatprep.subr.bf16.mxu1 %v3977_v17  ;;  %v4003_v17 = vld [vmem:[#allocation15 + $0xe0] sm:$0xff]  }
 0xc66   : > { %2366 = vmatpush1.bf16.msra.mxu0 %v3972_v18  ;;  %v4004_v18 = vld [vmem:[#allocation15 + $0x20] sm:$0xff]  }
 0xc67   : > { %2079 = vadd.xlane.f32.xlu0 %v5060_v0  ;;  %2367 = vmatprep.subr.bf16.mxu0 %v3980_v47  ;;  %v4006_v47 = vld [vmem:[#allocation15 + $0x58] sm:$0xff]  }
 0xc68   : > { %2419 = vmatpush1.bf16.msra.mxu1 %v3975_v20  ;;  %v4005_v20 = vld [vmem:[#allocation15 + $0xa0] sm:$0xff]  }
 0xc69   : > { %2420 = vmatprep.subr.bf16.mxu1 %v3983_v52  ;;  %v4007_v52 = vld [vmem:[#allocation15 + $0xd8] sm:$0xff]  }
 0xc6a   : > { %2368 = vmatpush1.bf16.msra.mxu0 %v3978_v21  ;;  %v4008_v21 = vld [vmem:[#allocation15 + $0x18] sm:$0xff]  }
 0xc6b   : > { %2369 = vmatprep.subr.bf16.mxu0 %v3986_v49  ;;  %v4010_v49 = vld [vmem:[#allocation15 + $0x50] sm:$0xff]  }
 0xc6c   : > { %2421 = vmatpush1.bf16.msra.mxu1 %v3981_v48  ;;  %v4009_v48 = vld [vmem:[#allocation15 + $0x98] sm:$0xff]  }
 0xc6d   : > { %2422 = vmatprep.subr.bf16.mxu1 %v3989_v32  ;;  %v4011_v32 = vld [vmem:[#allocation15 + $0xd0] sm:$0xff]  }
 0xc6e   : > { %2370 = vmatpush1.bf16.msra.mxu0 %v3984_v53  ;;  %v4012_v53 = vld [vmem:[#allocation15 + $0x10] sm:$0xff]  }
 0xc6f   : > { %3524 = vmatprep.subr.bf16.mxu0 %v3990_v33 }
 0xc70   : > { %2423 = vmatpush1.bf16.msra.mxu1 %v3987_v50  ;;  %v4013_v50 = vld [vmem:[#allocation15 + $0x90] sm:$0xff]  }
 0xc71   : > { %3552 = vmatprep.subr.bf16.mxu1 %v3991_v34 }
 0xce8   : > { %v2076_v5 = vpop.xlane.xlu1 %2075 }
 0xce9   : > { %v2083_v46 = vmul.f32 0.0078125, %v2076_v5 }
 0xceb   : > { %v5064_v6 = vsub.f32 %v5051_v55, %v2083_v46 }
 0xcec   : > { %v2082_v41 = vpop.xlane.xlu1 %2081  ;;  %v2078_v7 = vpop.xlane.xlu0 %2077 }
 0xced   : > { %v2086_v8 = vmul.f32 0.0078125, %v2082_v41  ;;  %v2084_v9 = vmul.f32 0.0078125, %v2078_v7  ;;  %v2091_v10 = vmul.f32 %v5064_v6, %v5064_v6  ;;  %v3382_v7 = vld [vmem:[%s5324_s8] ss:$0 sm:$0xff] }
 0xcef   : > { %v5069_v11 = vsub.f32 %v5056_v63, %v2084_v9  ;;  %2095 = vadd.xlane.f32.xlu0 %v2091_v10  ;;  %v5072_v60 = vsub.f32 %v5054_v62, %v2086_v8 }
 0xcf0   : > { %v2080_v12 = vpop.xlane.xlu0 %2079 }
 0xcf1   : > { %v2085_v13 = vmul.f32 0.0078125, %v2080_v12  ;;  %v2092_v14 = vmul.f32 %v5069_v11, %v5069_v11  ;;  %v2094_v22 = vmul.f32 %v5072_v60, %v5072_v60  ;;  %v3383_v12 = vld [vmem:[%s5392_s19] ss:$0 sm:$0xff] }
 0xcf3   : > { %v5077_v16 = vsub.f32 %v5060_v0, %v2085_v13  ;;  %2097 = vadd.xlane.f32.xlu1 %v2092_v14 }
 0xcf5   : > { %v2093_v24 = vmul.f32 %v5077_v16, %v5077_v16 }
 0xcf7   : > { %2101 = vadd.xlane.f32.xlu1 %v2094_v22  ;;  %2099 = vadd.xlane.f32.xlu0 %v2093_v24 }
 0xd78   : > { %v2096_v58 = vpop.xlane.xlu0 %2095 }
 0xd79   : > { %v2103_v51 = vmul.f32 0.0078125, %v2096_v58  ;;  %v4014_v58 = vld [vmem:[#allocation15 + $0x48] sm:$0xff]  }
 0xd7b   : > { %v2107_v54 = vadd.f32 1e-05, %v2103_v51  ;;  %v4015_v51 = vld [vmem:[#allocation15 + $0xc8] sm:$0xff]  }
 0xd7c   : > { %v2098_v56 = vpop.xlane.xlu1 %2097 }
 0xd7d   : > { %4094 = vrsqrt.f32 %v2107_v54  ;;  %v2104_v57 = vmul.f32 0.0078125, %v2098_v56  ;;  %v4016_v54 = vld [vmem:[#allocation15 + $0x8] sm:$0xff]  }
 0xd7e   : > { %v4017_v56 = vld [vmem:[#allocation15 + $0x88] sm:$0xff]  }
 0xd7f   : > { %v2108_v59 = vadd.f32 1e-05, %v2104_v57  ;;  %v4018_v57 = vld [vmem:[#allocation15 + $0x40] sm:$0xff]  }
 0xd80   : > { %v2102_v61 = vpop.xlane.xlu1 %2101  ;;  %v2100_v1 = vpop.xlane.xlu0 %2099 }
 0xd81   : > { %4096 = vrsqrt.f32 %v2108_v59  ;;  %v2106_v2 = vmul.f32 0.0078125, %v2102_v61  ;;  %v2105_v3 = vmul.f32 0.0078125, %v2100_v1  ;;  %v4019_v59 = vld [vmem:[#allocation15 + $0xc0] sm:$0xff]  }
 0xd82   : > { %v4020_v61 = vld [vmem:[#allocation15] sm:$0xff]  }
 0xd83   : > { %v2110_v4 = vadd.f32 1e-05, %v2106_v2  ;;  %v2109_v5 = vadd.f32 1e-05, %v2105_v3  ;;  %v4021_v1 = vld [vmem:[#allocation15 + $0x80] sm:$0xff]   ;;  %v2189_v3 = vsub.s32 3, %v4870_v15 }
 0xd84   : > { %v2173_v2 = vld [vmem:[%s5393_s14] sm:$0xf] }
 0xd85   : > { %4098 = vrsqrt.f32 %v2110_v4  ;;  %v5101_v4 = vrot.slane %v2173_v2, %v806_v19 }
 0xd86   : > { %4100 = vrsqrt.f32 %v2109_v5  ;;  %v5105_v5 = vrot.slane %v2173_v2, %v814_v23 }
 0xd8a   : > { %v4095_v46 = vpop.eup %4094 }
 0xd8b   : > { %v2115_v41 = vmul.f32 %v4095_v46, %v5064_v6 }
 0xd8d   : > { %v2125_v10 = vmul.f32 %v3382_v7, %v2115_v41 }
 0xd8e   : > { %v4097_v8 = vpop.eup %4096 }
 0xd8f   : > { %v2116_v9 = vmul.f32 %v4097_v8, %v5069_v11  ;;  %v2135_v24 = vadd.f32 %v3383_v12, %v2125_v10  ;;  %v5111_v8 = vrot.slane %v2173_v2, %v2189_v3 }
 0xd91   : > { %v2126_v13 = vmul.f32 %v3382_v7, %v2116_v9 }
 0xd92   : > { %v4099_v14 = vpop.eup %4098 }
 0xd93   : > { %v4101_v22 = vpop.eup %4100  ;;  %v2136_v25 = vadd.f32 %v3383_v12, %v2126_v13  ;;  %v2118_v26 = vmul.f32 %v4099_v14, %v5072_v60  ;;  %v3993_v60 = vld [vmem:[#allocation15 + $0xb8] sm:$0xff]  }
 0xd94   : > { %v2117_v6 = vmul.f32 %v4101_v22, %v5077_v16  ;;  %v3994_v16 = vld [vmem:[#allocation15 + $0x70] sm:$0xff]  }
 0xd95   : > { %v2139_v27 = vpack.c.bf16 %v2136_v25, %v2135_v24  ;;  %v2128_v28 = vmul.f32 %v3382_v7, %v2118_v26 }
 0xd96   : > { %v2127_v29 = vmul.f32 %v3382_v7, %v2117_v6  ;;  %v5109_v7 = vrot.slane %v2173_v2, %v810_v35 }
 0xd97   : > { %2388 = vmatmul.mubr.bf16.vlgmr.msra.gmra.mxu0 %v2139_v27  ;;  %2441 = vmatmul.mubr.bf16.vlgmr.msra.gmra.mxu1 %v2139_v27  ;;  %v2138_v30 = vadd.f32 %v3383_v12, %v2128_v28 }
 0xd98   : > { %2397 = vmatprep.mubr.bf16.mxu0 %v4519_v43  ;;  %2450 = vmatprep.mubr.bf16.mxu1 %v4519_v43  ;;  %v2137_v11 = vadd.f32 %v3383_v12, %v2127_v29  ;;  %v3998_v43 = vld [vmem:[#allocation15 + $0x68] sm:$0xff]  }
 0xd99   : > { %3525 = vmatpush3.bf16.msra.mxu0 %v3992_v36  ;;  %3553 = vmatpush3.bf16.msra.mxu1 %v3993_v60 }
 0xd9a   : > { %v2140_v31 = vpack.c.bf16 %v2138_v30, %v2137_v11  ;;  %3526 = vmatprep.subr.bf16.mxu0 %v3994_v16  ;;  %3554 = vmatprep.subr.bf16.mxu1 %v3995_v37 }
 0xd9d   : > { %3527 = vmatpush3.bf16.msra.mxu0 %v3996_v38  ;;  %3555 = vmatpush3.bf16.msra.mxu1 %v3997_v39 }
 0xd9e   : > { %3528 = vmatprep.subr.bf16.mxu0 %v3998_v43  ;;  %3556 = vmatprep.subr.bf16.mxu1 %v3999_v40 }
 0xd9f   : > { %2398 = vmatmul.mubr.bf16.gmra.mxu0 %v2140_v31  ;;  %2451 = vmatmul.mubr.bf16.gmra.mxu1 %v2140_v31 }
 0xda1   : > { %3529 = vmatpush3.bf16.msra.mxu0 %v4000_v42  ;;  %3557 = vmatpush3.bf16.msra.mxu1 %v4001_v44 }
 0xda2   : > { %3530 = vmatprep.subr.bf16.mxu0 %v4002_v45  ;;  %3558 = vmatprep.subr.bf16.mxu1 %v4003_v17 }
 0xda5   : > { %3531 = vmatpush3.bf16.msra.mxu0 %v4004_v18  ;;  %3559 = vmatpush3.bf16.msra.mxu1 %v4005_v20 }
 0xda6   : > { %3532 = vmatprep.subr.bf16.mxu0 %v4006_v47  ;;  %3560 = vmatprep.subr.bf16.mxu1 %v4007_v52 }
 0xda9   : > { %3533 = vmatpush3.bf16.msra.mxu0 %v4008_v21  ;;  %3561 = vmatpush3.bf16.msra.mxu1 %v4009_v48 }
 0xdaa   : > { %3534 = vmatprep.subr.bf16.mxu0 %v4010_v49  ;;  %3562 = vmatprep.subr.bf16.mxu1 %v4011_v32 }
 0xdad   : > { %3535 = vmatpush3.bf16.msra.mxu0 %v4012_v53  ;;  %3563 = vmatpush3.bf16.msra.mxu1 %v4013_v50 }
 0xdae   : > { %3536 = vmatprep.subr.bf16.mxu0 %v4014_v58  ;;  %3564 = vmatprep.subr.bf16.mxu1 %v4015_v51 }
 0xdb1   : > { %3537 = vmatpush3.bf16.msra.mxu0 %v4016_v54  ;;  %3565 = vmatpush3.bf16.msra.mxu1 %v4017_v56 }
 0xdb2   : > { %3538 = vmatprep.subr.bf16.mxu0 %v4018_v57  ;;  %3566 = vmatprep.subr.bf16.mxu1 %v4019_v59 }
 0xdb5   : > { %3539 = vmatpush3.bf16.msra.mxu0 %v4020_v61  ;;  %3567 = vmatpush3.bf16.msra.mxu1 %v4021_v1 }
 0xe57   : > { %v2389_v46 = vpop.f32.mrf.mxu0  ;;  %v2442_v41 = vpop.f32.mrf.mxu1 }
 0xe58   : > { %v5114_v9 = vadd.f32 %v2389_v46, %v5101_v4  ;;  %v5117_v10 = vadd.f32 %v2442_v41, %v5105_v5 }
 0xe59   : > { %v2391_v19 = vpop.f32.mrf.mxu0  ;;  %v2444_v12 = vpop.f32.mrf.mxu1 }
 0xe5a   : > { %v2477_v13 = vmul.f32 0.044715, %v5114_v9  ;;  %v2479_v23 = vmul.f32 0.044715, %v5117_v10  ;;  %v5122_v14 = vadd.f32 %v2391_v19, %v5109_v7  ;;  %v5125_v15 = vadd.f32 %v2444_v12, %v5111_v8 }
 0xe5b   : > { %v2393_v35 = vpop.f32.mrf.mxu0  ;;  %v2446_v22 = vpop.f32.mrf.mxu1 }
 0xe5c   : > { %v2493_v24 = vmul.f32 %v2477_v13, %v5114_v9  ;;  %v2495_v25 = vmul.f32 %v2479_v23, %v5117_v10  ;;  %v5130_v26 = vadd.f32 %v2393_v35, %v5101_v4  ;;  %v5133_v6 = vadd.f32 %v2446_v22, %v5105_v5 }
 0xe5d   : > { %v2395_v27 = vpop.f32.mrf.mxu0  ;;  %v2448_v28 = vpop.f32.mrf.mxu1  ;;  %v2478_v30 = vmul.f32 0.044715, %v5122_v14  ;;  %v2480_v33 = vmul.f32 0.044715, %v5125_v15 }
 0xe5e   : > { %v2509_v29 = vmul.f32 %v2493_v24, %v5114_v9  ;;  %v2511_v11 = vmul.f32 %v2495_v25, %v5117_v10  ;;  %v2481_v31 = vmul.f32 0.044715, %v5130_v26  ;;  %v2483_v34 = vmul.f32 0.044715, %v5133_v6 }
 0xe5f   : > { %v2399_v36 = vpop.f32.mrf.mxu0  ;;  %v2452_v60 = vpop.f32.mrf.mxu1  ;;  %v5144_v38 = vadd.f32 %v2395_v27, %v5109_v7  ;;  %v5148_v43 = vadd.f32 %v2448_v28, %v5111_v8  ;;  %v2494_v45 = vmul.f32 %v2478_v30, %v5122_v14  ;;  %v2496_v20 = vmul.f32 %v2480_v33, %v5125_v15 }
 0xe60   : > { %v2525_v16 = vadd.f32 %v2509_v29, %v5114_v9  ;;  %v2497_v37 = vmul.f32 %v2481_v31, %v5130_v26  ;;  %v2499_v39 = vmul.f32 %v2483_v34, %v5133_v6  ;;  %v2527_v44 = vadd.f32 %v2511_v11, %v5117_v10 }
 0xe61   : > { %v2401_v40 = vpop.f32.mrf.mxu0  ;;  %v2454_v42 = vpop.f32.mrf.mxu1  ;;  %v2482_v18 = vmul.f32 0.044715, %v5144_v38  ;;  %v2484_v52 = vmul.f32 0.044715, %v5148_v43  ;;  %v5158_v21 = vadd.f32 %v2399_v36, %v5101_v4  ;;  %v2510_v56 = vmul.f32 %v2494_v45, %v5122_v14 }
 0xe62   : > { %v2513_v17 = vmul.f32 %v2497_v37, %v5130_v26  ;;  %v2515_v47 = vmul.f32 %v2499_v39, %v5133_v6  ;;  %v2541_v49 = vmul.f32 0.7978846, %v2525_v16  ;;  %v5163_v50 = vadd.f32 %v2401_v40, %v5109_v7 }
 0xe63   : > { %v2403_v48 = vpop.f32.mrf.mxu0  ;;  %v2498_v53 = vmul.f32 %v2482_v18, %v5144_v38  ;;  %v2456_v58 = vpop.f32.mrf.mxu1  ;;  %v2543_v54 = vmul.f32 0.7978846, %v2527_v44  ;;  %v5168_v57 = vadd.f32 %v2452_v60, %v5105_v5  ;;  %v2512_v61 = vmul.f32 %v2496_v20, %v5125_v15 }
 0xe64   : > { %v2529_v32 = vadd.f32 %v2513_v17, %v5130_v26  ;;  %v2531_v51 = vadd.f32 %v2515_v47, %v5133_v6  ;;  %v2486_v59 = vmul.f32 0.044715, %v5163_v50  ;;  %v2500_v1 = vmul.f32 %v2484_v52, %v5148_v43 }
 0xe65   : > { %v2485_v2 = vmul.f32 0.044715, %v5158_v21  ;;  %v5175_v3 = vadd.f32 %v2454_v42, %v5111_v8  ;;  %v2405_v46 = vpop.f32.mrf.mxu0  ;;  %4102 = vtanh.f32 %v2541_v49  ;;  %v2514_v19 = vmul.f32 %v2498_v53, %v5144_v38  ;;  %v2458_v13 = vpop.f32.mrf.mxu1 }
 0xe66   : > { %v2545_v41 = vmul.f32 0.7978846, %v2529_v32  ;;  %v5179_v12 = vadd.f32 %v2403_v48, %v5101_v4  ;;  %v2547_v23 = vmul.f32 0.7978846, %v2531_v51  ;;  %v2502_v35 = vmul.f32 %v2486_v59, %v5163_v50 }
 0xe67   : > { %v2488_v22 = vmul.f32 0.044715, %v5175_v3  ;;  %v5184_v24 = vadd.f32 %v2456_v58, %v5105_v5  ;;  %4104 = vtanh.f32 %v2543_v54  ;;  %v2487_v25 = vmul.f32 0.044715, %v5168_v57 }
 0xe68   : > { %v2489_v27 = vmul.f32 0.044715, %v5179_v12  ;;  %v5189_v28 = vadd.f32 %v2405_v46, %v5109_v7  ;;  %v2516_v4 = vmul.f32 %v2500_v1, %v5148_v43  ;;  %v2501_v29 = vmul.f32 %v2485_v2, %v5158_v21 }
 0xe69   : > { %v2504_v11 = vmul.f32 %v2488_v22, %v5175_v3  ;;  %v5195_v30 = vadd.f32 %v2458_v13, %v5111_v8  ;;  %4106 = vtanh.f32 %v2545_v41  ;;  %v2526_v31 = vadd.f32 %v2510_v56, %v5122_v14 }
 0xe6a   : > { %v2490_v5 = vmul.f32 0.044715, %v5189_v28  ;;  %v2530_v33 = vadd.f32 %v2514_v19, %v5144_v38  ;;  %4108 = vtanh.f32 %v2547_v23  ;;  %v2518_v7 = vmul.f32 %v2502_v35, %v5163_v50 }
 0xe6b   : > { %v2491_v34 = vmul.f32 0.044715, %v5184_v24  ;;  %v2492_v36 = vmul.f32 0.044715, %v5195_v30  ;;  %v2505_v60 = vmul.f32 %v2489_v27, %v5179_v12  ;;  %v2542_v8 = vmul.f32 0.7978846, %v2526_v31 }
 0xe6c   : > { %v2506_v16 = vmul.f32 %v2490_v5, %v5189_v28  ;;  %v2546_v37 = vmul.f32 0.7978846, %v2530_v33  ;;  %v2520_v39 = vmul.f32 %v2504_v11, %v5175_v3  ;;  %v2528_v42 = vadd.f32 %v2512_v61, %v5125_v15 }
 0xe6d   : > { %v2508_v40 = vmul.f32 %v2492_v36, %v5195_v30  ;;  %v2532_v44 = vadd.f32 %v2516_v4, %v5148_v43  ;;  %v2503_v45 = vmul.f32 %v2487_v25, %v5168_v57  ;;  %4110 = vtanh.f32 %v2542_v8 }
 0xe6e   : > { %v2522_v17 = vmul.f32 %v2506_v16, %v5189_v28  ;;  %4112 = vtanh.f32 %v2546_v37  ;;  %v2544_v20 = vmul.f32 0.7978846, %v2528_v42  ;;  %v2517_v52 = vmul.f32 %v2501_v29, %v5158_v21 }
 0xe6f   : > { %v2524_v18 = vmul.f32 %v2508_v40, %v5195_v30  ;;  %v2548_v47 = vmul.f32 0.7978846, %v2532_v44  ;;  %v2507_v48 = vmul.f32 %v2491_v34, %v5184_v24  ;;  %v2534_v49 = vadd.f32 %v2518_v7, %v5163_v50 }
 0xe70   : > { %v2538_v32 = vadd.f32 %v2522_v17, %v5189_v28  ;;  %v2521_v53 = vmul.f32 %v2505_v60, %v5179_v12  ;;  %4114 = vtanh.f32 %v2544_v20  ;;  %v2536_v58 = vadd.f32 %v2520_v39, %v5175_v3 }
 0xe71   : > { %4116 = vtanh.f32 %v2548_v47  ;;  %v2550_v51 = vmul.f32 0.7978846, %v2534_v49  ;;  %v2540_v59 = vadd.f32 %v2524_v18, %v5195_v30  ;;  %v2519_v1 = vmul.f32 %v2503_v45, %v5168_v57 }
 0xe72   : > { %v2554_v54 = vmul.f32 0.7978846, %v2538_v32  ;;  %v4103_v56 = vpop.eup %4102  ;;  %v2552_v61 = vmul.f32 0.7978846, %v2536_v58  ;;  %v2523_v2 = vmul.f32 %v2507_v48, %v5184_v24  ;;  %v2533_v46 = vadd.f32 %v2517_v52, %v5158_v21 }
 0xe73   : > { %4118 = vtanh.f32 %v2550_v51  ;;  %v2556_v19 = vmul.f32 0.7978846, %v2540_v59  ;;  %v2537_v13 = vadd.f32 %v2521_v53, %v5179_v12  ;;  %v2535_v27 = vadd.f32 %v2519_v1, %v5168_v57 }
 0xe74   : > { %v4105_v41 = vpop.eup %4104  ;;  %4120 = vtanh.f32 %v2554_v54  ;;  %v2549_v23 = vmul.f32 0.7978846, %v2533_v46  ;;  %v2539_v4 = vadd.f32 %v2523_v2, %v5184_v24  ;;  %v2462_v33 = vmul.f32 0.5, %v5122_v14 }
 0xe75   : > { %4122 = vtanh.f32 %v2552_v61  ;;  %v2553_v22 = vmul.f32 0.7978846, %v2537_v13  ;;  %v2551_v11 = vmul.f32 0.7978846, %v2535_v27  ;;  %v2465_v34 = vmul.f32 0.5, %v5130_v26 }
 0xe76   : > { %v4107_v35 = vpop.eup %4106  ;;  %4124 = vtanh.f32 %v2556_v19  ;;  %v2555_v5 = vmul.f32 0.7978846, %v2539_v4  ;;  %v2573_v60 = vadd.f32 1.0, %v4103_v56  ;;  %v2466_v16 = vmul.f32 0.5, %v5144_v38 }
 0xe77   : > { %v4109_v25 = vpop.eup %4108  ;;  %4126 = vtanh.f32 %v2549_v23  ;;  %v2577_v29 = vadd.f32 1.0, %v4107_v35  ;;  %v2461_v40 = vmul.f32 0.5, %v5114_v9  ;;  %v2467_v42 = vmul.f32 0.5, %v5133_v6 }
 0xe78   : > { %4128 = vtanh.f32 %v2553_v22  ;;  %v2579_v37 = vadd.f32 1.0, %v4109_v25  ;;  %v2575_v20 = vadd.f32 1.0, %v4105_v41  ;;  %v2464_v26 = vmul.f32 0.5, %v5125_v15 }
 0xe79   : > { %4130 = vtanh.f32 %v2551_v11  ;;  %v2593_v44 = vmul.f32 %v2577_v29, %v2465_v34  ;;  %v2468_v47 = vmul.f32 0.5, %v5148_v43  ;;  %v2589_v38 = vmul.f32 %v2573_v60, %v2461_v40  ;;  %v3416_v40 = vld [vmem:[%s5394_s21] ss:$0 sm:$0xff] }
 0xe7a   : > { %v4111_v31 = vpop.eup %4110  ;;  %4132 = vtanh.f32 %v2555_v5  ;;  %v2463_v49 = vmul.f32 0.5, %v5117_v10  ;;  %v2595_v53 = vmul.f32 %v2579_v37, %v2467_v42  ;;  %v2470_v61 = vmul.f32 0.5, %v5163_v50 }
 0xe7b   : > { %v4113_v7 = vpop.eup %4112  ;;  %v2574_v36 = vadd.f32 1.0, %v4111_v31  ;;  %v2605_v51 = vpack.c.bf16 %v2593_v44, %v2589_v38  ;;  %v2474_v15 = vmul.f32 0.5, %v5189_v28  ;;  %v2472_v10 = vmul.f32 0.5, %v5175_v3 }
 0xe7c   : > { %v2578_v8 = vadd.f32 1.0, %v4113_v7  ;;  %v2591_v59 = vmul.f32 %v2575_v20, %v2463_v49  ;;  %v2476_v46 = vmul.f32 0.5, %v5195_v30  ;;  %v2469_v50 = vmul.f32 0.5, %v5158_v21 }
 0xe7d   : > { %v4115_v39 = vpop.eup %4114  ;;  %v2590_v17 = vmul.f32 %v2574_v36, %v2462_v33  ;;  %v2473_v28 = vmul.f32 0.5, %v5179_v12  ;;  %v2471_v60 = vmul.f32 0.5, %v5168_v57  ;;  %v2475_v21 = vmul.f32 0.5, %v5184_v24 }
 0xe7e   : > { %v4117_v45 = vpop.eup %4116  ;;  %v2594_v14 = vmul.f32 %v2578_v8, %v2466_v16  ;;  %v2576_v18 = vadd.f32 1.0, %v4115_v39  ;;  %v2607_v13 = vpack.c.bf16 %v2595_v53, %v2591_v59 }
 0xe7f   : > { %v2580_v52 = vadd.f32 1.0, %v4117_v45 }
 0xe80   : > { %v4119_v48 = vpop.eup %4118  ;;  %v2606_v32 = vpack.c.bf16 %v2594_v14, %v2590_v17  ;;  %v2592_v58 = vmul.f32 %v2576_v18, %v2464_v26 }
 0xe81   : > { %v4121_v9 = vpop.eup %4120  ;;  %v2596_v6 = vmul.f32 %v2580_v52, %v2468_v47  ;;  %v2582_v54 = vadd.f32 1.0, %v4119_v48 }
 0xe82   : > { %v4123_v56 = vpop.eup %4122  ;;  %2908 = vmatprep.mubr.bf16.mxu0 %v2606_v32  ;;  %v2586_v43 = vadd.f32 1.0, %v4121_v9 }
 0xe83   : > { %v4125_v1 = vpop.eup %4124  ;;  %v2608_v2 = vpack.c.bf16 %v2596_v6, %v2592_v58  ;;  %2909 = vmatmul.mubr.bf16.vlgmr.msra.gmra.mxu0 %v2605_v51  ;;  %v2584_v41 = vadd.f32 1.0, %v4123_v56  ;;  %v2598_v23 = vmul.f32 %v2582_v54, %v2470_v61 }
 0xe84   : > { %v4127_v19 = vpop.eup %4126  ;;  %v2602_v35 = vmul.f32 %v2586_v43, %v2474_v15  ;;  %v2588_v22 = vadd.f32 1.0, %v4125_v1 }
 0xe85   : > { %v4129_v25 = vpop.eup %4128  ;;  %2957 = vmatprep.mubr.bf16.mxu1 %v2608_v2  ;;  %v2581_v27 = vadd.f32 1.0, %v4127_v19  ;;  %v2600_v29 = vmul.f32 %v2584_v41, %v2472_v10 }
 0xe86   : > { %2958 = vmatmul.mubr.bf16.vlgmr.msra.gmra.mxu1 %v2607_v13  ;;  %v2610_v4 = vpack.c.bf16 %v2602_v35, %v2598_v23  ;;  %v2604_v11 = vmul.f32 %v2588_v22, %v2476_v46  ;;  %v2585_v3 = vadd.f32 1.0, %v4129_v25  ;;  %v4131_v5 = vpop.eup %4130 }
 0xe87   : > { %v2597_v31 = vmul.f32 %v2581_v27, %v2469_v50  ;;  %v4133_v7 = vpop.eup %4132  ;;  %v2583_v34 = vadd.f32 1.0, %v4131_v5 }
 0xe88   : > { %2916 = vmatprep.mubr.bf16.mxu0 %v2610_v4  ;;  %v2612_v30 = vpack.c.bf16 %v2604_v11, %v2600_v29  ;;  %v2601_v33 = vmul.f32 %v2585_v3, %v2473_v28  ;;  %v2587_v12 = vadd.f32 1.0, %v4133_v7 }
 0xe89   : > { %v2599_v16 = vmul.f32 %v2583_v34, %v2471_v60 }
 0xe8a   : > { %2965 = vmatprep.mubr.bf16.mxu1 %v2612_v30  ;;  %v2609_v36 = vpack.c.bf16 %v2601_v33, %v2597_v31  ;;  %v2603_v8 = vmul.f32 %v2587_v12, %v2475_v21 }
 0xe8c   : > { %2917 = vmatmul.mubr.bf16.gmra.mxu0 %v2609_v36  ;;  %v2611_v37 = vpack.c.bf16 %v2603_v8, %v2599_v16 }
 0xe8e   : > { %2966 = vmatmul.mubr.bf16.gmra.mxu1 %v2611_v37 }
 0xf43   : > { %v3540_v39 = vpop.f32.mrf.mxu0 }
 0xf45   : > { %v3541_v42 = vpop.f32.mrf.mxu0 }
 0xf46   : > { %v3568_v44 = vpop.f32.mrf.mxu1  ;;  %v3542_v45 = vadd.f32 %v3541_v42, %v3540_v39 }
 0xf47   : > { %v3543_v17 = vpop.f32.mrf.mxu0 }
 0xf48   : > { %v2911_v14 = vadd.f32 %v3542_v45, %v3416_v40  ;;  %v3569_v18 = vpop.f32.mrf.mxu1 }
 0xf49   : > { %v3570_v57 = vadd.f32 %v3569_v18, %v3568_v44  ;;  %v3544_v20 = vpop.f32.mrf.mxu0 }
 0xf4a   : > { %v3571_v24 = vpop.f32.mrf.mxu1  ;;  %v3545_v26 = vadd.f32 %v3544_v20, %v3543_v17 }
 0xf4b   : > { %v2960_v47 = vadd.f32 %v3570_v57, %v2911_v14 }
 0xf4c   : > { %v2914_v52 = vadd.f32 %v3545_v26, %v3416_v40  ;;  %v3572_v38 = vpop.f32.mrf.mxu1  ;;  %v3546_v48 = vpop.f32.mrf.mxu0 }
 0xf4d   : > { %v2974_v49 = vadd.f32 %v2960_v47, %v5051_v55  ;;  %v3573_v32 = vadd.f32 %v3572_v38, %v3571_v24 }
 0xf4e   : > { %v3547_v53 = vpop.f32.mrf.mxu0  ;;  %v3574_v6 = vpop.f32.mrf.mxu1 }
 0xf4f   : > { %2978 = vst [vmem:[#allocation2 + $0x10] sm:$0xff] %v2974_v49  ;;  %v2963_v9 = vadd.f32 %v3573_v32, %v2914_v52  ;;  %v3548_v58 = vadd.f32 %v3547_v53, %v3546_v48 }
 0xf50   : > { %v3549_v51 = vpop.f32.mrf.mxu0  ;;  %v3575_v59 = vpop.f32.mrf.mxu1 }
 0xf51   : > { %v2975_v54 = vadd.f32 %v2963_v9, %v5056_v63  ;;  %v2919_v56 = vadd.f32 %v3548_v58, %v3416_v40  ;;  %v3576_v15 = vadd.f32 %v3575_v59, %v3574_v6 }
 0xf52   : > { %v3550_v61 = vpop.f32.mrf.mxu0  ;;  %v3577_v1 = vpop.f32.mrf.mxu1 }
 0xf53   : > { %2979 = vst [vmem:[#allocation2] sm:$0xff] %v2975_v54  ;;  %v3551_v43 = vadd.f32 %v3550_v61, %v3549_v51  ;;  %v2968_v2 = vadd.f32 %v3576_v15, %v2919_v56 }
 0xf54   : > { %v3578_v46 = vpop.f32.mrf.mxu1 }
 0xf55   : > { %v2922_v10 = vadd.f32 %v3551_v43, %v3416_v40  ;;  %v2976_v55 = vadd.f32 %v2968_v2, %v5060_v0  ;;  %v3579_v41 = vadd.f32 %v3578_v46, %v3577_v1 }
 0xf57   : > { %2980 = vst [vmem:[#allocation2 + $0x18] sm:$0xff] %v2976_v55  ;;  %v2971_v19 = vadd.f32 %v3579_v41, %v2922_v10  ;;  %2985 = sbr.rel (%p3449_p10) target bundleno = 4167 (0x1047), region = 128 }
 0xf59   : > { %v2977_v13 = vadd.f32 %v2971_v19, %v5054_v62 }
 0xf5b   : > { %2981 = vst [vmem:[#allocation2 + $0x8] sm:$0xff] %v2977_v13 }
 0xf5c   : > { %v4138_v63 = vld [vmem:[#allocation17 + $0x38] sm:$0xff]   ;;  %v2986_v23 = vpack.c.bf16 %v2975_v54, %v2974_v49  ;;  %v4139_v35 = vld [vmem:[#allocation17 + $0x30] sm:$0xff]   ;;  %v4140_v22 = vld [vmem:[#allocation17 + $0x28] sm:$0xff]   ;;  %v2987_v27 = vpack.c.bf16 %v2977_v13, %v2976_v55 }
 0xf5d   : > { %3706 = vmatprep.subr.bf16.mxu0 %v4138_v63  ;;  %v4141_v0 = vld [vmem:[#allocation17 + $0x20] sm:$0xff]   ;;  %v4142_v25 = vld [vmem:[#allocation17 + $0x18] sm:$0xff]   ;;  %v4143_v62 = vld [vmem:[#allocation17 + $0x10] sm:$0xff]  }
 0xf5e   : > { %3722 = vmatprep.mubr.bf16.mxu0 %v2986_v23  ;;  %3707 = vmatpush3.bf16.msra.mxu0 %v4138_v63  ;;  %v4144_v50 = vld [vmem:[#allocation17 + $0x8] sm:$0xff]   ;;  %v4145_v28 = vld [vmem:[#allocation17] sm:$0xff]   ;;  %v3450_v4 = vld [vmem:[%s5395_s26] ss:$0 sm:$0xff] }
 0xf5f   : > { %3708 = vmatprep.subr.bf16.mxu0 %v4139_v35 }
 0xf62   : > { %3709 = vmatpush3.bf16.msra.mxu0 %v4139_v35 }
 0xf63   : > { %3710 = vmatprep.subr.bf16.mxu0 %v4140_v22 }
 0xf66   : > { %3711 = vmatpush3.bf16.msra.mxu0 %v4140_v22 }
 0xf67   : > { %3712 = vmatprep.subr.bf16.mxu0 %v4141_v0 }
 0xf6a   : > { %3713 = vmatpush3.bf16.msra.mxu0 %v4141_v0 }
 0xf6b   : > { %3714 = vmatprep.subr.bf16.mxu0 %v4142_v25 }
 0xf6e   : > { %3715 = vmatpush3.bf16.msra.mxu0 %v4142_v25 }
 0xf6f   : > { %3716 = vmatprep.subr.bf16.mxu0 %v4143_v62 }
 0xf72   : > { %3717 = vmatpush3.bf16.msra.mxu0 %v4143_v62 }
 0xf73   : > { %3718 = vmatprep.subr.bf16.mxu0 %v4144_v50 }
 0xf76   : > { %3719 = vmatpush3.bf16.msra.mxu0 %v4144_v50 }
 0xf77   : > { %3720 = vmatprep.subr.bf16.mxu0 %v4145_v28 }
 0xf7a   : > { %3721 = vmatpush3.bf16.msra.mxu0 %v4145_v28 }
 0xf7d   : > { %3723 = vmatmul.mubr.bf16.vlgmr.msra.gmra.mxu0 %v2987_v27 }
0x103d   : > { %v3724_v29 = vpop.f32.mrf.mxu0 }
0x103e   : > { %v3102_v11 = vadd.f32 %v3724_v29, %v3450_v4 }
0x103f   : > { %v3093_v3 = vpop.f32.mrf.mxu0 }
0x1040   : > { %3110 = vst [vmem:[%s4845_s30 + $0x10] sm:$0xff] %v3102_v11  ;;  %v3094_v5 = vadd.f32 %v3450_v4, %v3093_v3 }
0x1041   : > { %v3725_v30 = vpop.f32.mrf.mxu0 }
0x1042   : > { %3108 = vst [vmem:[%s4845_s30] sm:$0xff] %v3094_v5  ;;  %v3105_v31 = vadd.f32 %v3725_v30, %v3450_v4 }
0x1043   : > { %v3096_v33 = vpop.f32.mrf.mxu0 }
0x1044   : > { %3111 = vst [vmem:[%s4845_s30 + $0x18] sm:$0xff] %v3105_v31  ;;  %v3097_v7 = vadd.f32 %v3450_v4, %v3096_v33 }
0x1046   : > { %3109 = vst [vmem:[%s4845_s30 + $0x8] sm:$0xff] %v3097_v7 }
0x1047 PF: > { %s5396_s29 = sld [smem:[#allocation28_spill]]  ;;  %s3126_s12 = sshll.u32 %s4845_s30, 4  ;;  %s5263_s12 = int_to_ptr.vmem [resolvable:$true] %s3126_s12 }
0x1048   : > { %s5397_s11 = sld [smem:[#allocation46_spill]]  ;;  %s3113_s13 = scalar_lea.sflag [#allocation5], %s4815_s10 }
0x1049   : > { %s4384_s18 = scalar_lea.vmem %s5263_s12, 512  ;;  %s4523_s15 = smov [#allocation18]  }
0x104a   : > { %p4385_p12 = scmp.ne.s32.totalorder %s5263_s12, %s4384_s18  ;;  %s4388_s3 = sshll.u32 %s4523_s15, 4  ;;  %s4389_s3 = int_to_ptr.vmem [resolvable:$false] %s4388_s3 }
0x104b   : > { %s4390_s19 = scalar_lea.vmem %s4389_s3, 1024  ;;  %p4391_p8 = scmp.lt.s32.totalorder %s5263_s12, %s4389_s3 }
0x104c   : > { %p4386_p13 = pnand %p4385_p12, %p4765_p0  ;;  %p4392_p3 = scmp.lt.s32.totalorder %s4390_s19, %s4384_s18 }
0x104d   : > { %s3465_s17 = sshll.u32 %s5396_s29, 9 }
0x104e   : > { %s5260_s9 = scalar_lea.hbm %s5397_s11, %s3465_s17  ;;  %p4387_p6 = pneg %p4386_p13 }
0x104f   : > { %p4393_p4 = por %p4392_p3, %p4391_p8 }
0x1051   : > { %p4394_p7 = pnand %p4393_p4, %p4387_p6 }
0x1053   : > { %4397 = shalt.err (!%p4394_p7)
}
0x1054   : > { %s4398_s30 = scalar_lea.hbm %s5260_s9, 512  ;;  %s4402_s14 = scalar_lea.hbm %s5397_s11, 1024 }
0x1055   : > { %p4399_p9 = scmp.ne.s32.totalorder %s5260_s9, %s4398_s30  ;;  %p4403_p11 = scmp.lt.s32.totalorder %s5260_s9, %s5397_s11 }
0x1056   : > { %p4404_p10 = scmp.lt.s32.totalorder %s4402_s14, %s4398_s30 }
0x1057   : > { %p4400_p1 = pnand %p4399_p9, %p4765_p0 }
0x1058   : > { %p4405_p12 = por %p4404_p10, %p4403_p11 }
0x1059   : > { %p4401_p5 = pneg %p4400_p1 }
0x105b   : > { %p4406_p13 = pnand %p4405_p12, %p4401_p5 }
0x105d   : > { %4409 = shalt.err (!%p4406_p13)
}
0x105e   : > { %s4524_s21 = smov 128   ;;  %s4525_s24 = smov 8  }
0x105f   : > { %3766 = dma.vmem_to_hbm [thread:$0]  (%p4765_p0), %s5263_s12, 512, %s5260_s9, %s3113_s13, %s4524_s21, %s4524_s21, %s4525_s24  }
0x1060 PF: > { %s5398_s23 = sld [smem:[#allocation26_spill]]  ;;  %p3816_p6 = scmp.ge.s32.totalorder %s4500_s28, 2 }
0x1062   : > { %p3798_p8 = pnand %p3816_p6, %p4769_p2 }
0x1064   : > { %p3799_p3 = pneg %p3798_p8 }
0x1066   : > { %s3141_s29 = sand.u32 1, %s5398_s23  }
0x1067   : > { %s3142_s17 = scalar_lea.sflag [#allocation5], %s3141_s29 }
0x1068   : > { %4467 = dma.done.wait (%p3799_p3), %s3142_s17, 512  }
0x1069   : > { %4469 = vsyncadd (%p3799_p3), %s3142_s17, 4294966784  ;;  %s38_s28 = sadd.s32 1, %s4500_s28   ;;  %s5400_s2 = sld [smem:[#allocation27_spill]] }
0x106a   : > { %p35_p4 = scmp.ge.s32.totalorder %s38_s28, 6   ;;  %s5401_s23 = sld [smem:[#allocation33_spill]] }
0x106b   : > { %s5402_s24 = sld [smem:[#allocation29_spill]]  ;;  %s5405_s21 = smov %s4476_s22 }
0x106c   : > { %s5403_s26 = sld [smem:[#allocation30_spill]]  ;;  %s5407_s25 = smov %s4496_s27 }
0x106d   : > { %s5404_s16 = sld [smem:[#allocation31_spill]] }
0x106f   : > { %s5406_s22 = smov %s5400_s2  ;;  %37 = sbr.rel (!%p35_p4) target bundleno = 26 (0x1a), region = 178 }
0x1073   : > { %s5408_s27 = smov %s5404_s16 }
0x1074   :  { %3147 = vsyncpa [#allocation4], 1 }
0x1075   :  { %3149 = vsyncpa [#allocation4 + $0x1], 1 }
0x1076   :  { %3150 = vsyncpa [#allocation7], 1 }
0x1077   :  { %3152 = vsyncpa [#allocation7 + $0x1], 1 }
0x1078   :  { %3153 = vsyncpa [#allocation10], 1 }
0x1079   :  { %3154 = vsyncpa [#allocation13], 1 }
0x107a   :  { %3155 = vsyncpa [#allocation16], 1 }
0x107b   :  { %3156 = vsyncpa [#allocation5], 1 }
0x107c   :  { %3158 = vsyncpa [#allocation5 + $0x1], 1 }

</bundles_post_ra>
